<compile_context>
chip_gen: v5e
topology: v5e:2x2
jax: 0.10.0
libtpu: 0.0.40
codegen_flags: <defaults>
</compile_context>

<pallas_src>
import functools

import jax
import jax.numpy as jnp
from jax.experimental import pallas as pl
from jax.experimental.pallas import tpu as pltpu

# Padded (lane-dense) layer widths.
_H1 = 384   # 300 -> 384
_H2 = 256   # 200 -> 256
_NO = 128   # 10  -> 128
_IN = 784
_TILE_B_MAX = 512


def _mlp_kernel(x_ref, w1_ref, b1_ref, w2_ref, b2_ref, w3_ref, b3_ref, o_ref):
    # Layer 1: (TB, 784) @ (784, 384) -> f32 accumulate; bias + sigmoid in f32.
    h1 = jnp.dot(x_ref[...], w1_ref[...], preferred_element_type=jnp.float32)
    h1 = jax.nn.sigmoid(h1 + b1_ref[...])
    # Layer 2: (TB, 384) @ (384, 256). Padded h1 columns are sigmoid(0)=0.5 but
    # the corresponding w2 rows are zero, so they contribute nothing.
    h2 = jnp.dot(h1.astype(w2_ref.dtype), w2_ref[...],
                 preferred_element_type=jnp.float32)
    h2 = jax.nn.sigmoid(h2 + b2_ref[...])
    # Layer 3: (TB, 256) @ (256, 128) + bias. No softmax in the PyTorch forward.
    o_ref[...] = (
        jnp.dot(h2.astype(w3_ref.dtype), w3_ref[...],
                preferred_element_type=jnp.float32)
        + b3_ref[...]
    )


def _round_up(n, m):
    return ((n + m - 1) // m) * m


def _pad_to(a, shape):
    return jnp.pad(a, [(0, s - d) for d, s in zip(a.shape, shape)])


def prepare_params(params, compute_dtype=jnp.bfloat16):
    """One-time conversion of PyTorch-layout params (W: (out,in), b: (out,)).

    Transposes to (in, out), zero-pads to lane-dense (multiple-of-128) widths
    and casts matmul operands to `compute_dtype`.  Biases stay float32.
    Do this ONCE outside the forward to avoid per-call transpose/pad passes.
    """
    w1, b1, w2, b2, w3, b3 = params
    w1t = _pad_to(w1.T.astype(jnp.float32), (_IN, _H1)).astype(compute_dtype)
    # Zero-padded rows 300:384 of w2 cancel the sigmoid(0)=0.5 padded h1 cols.
    w2t = _pad_to(w2.T.astype(jnp.float32), (_H1, _H2)).astype(compute_dtype)
    # Zero-padded rows 200:256 of w3 cancel the sigmoid(0)=0.5 padded h2 cols;
    # zero-padded columns 10:128 produce zero logits that get sliced away.
    w3t = _pad_to(w3.T.astype(jnp.float32), (_H2, _NO)).astype(compute_dtype)
    b1r = _pad_to(b1.reshape(1, -1).astype(jnp.float32), (1, _H1))
    b2r = _pad_to(b2.reshape(1, -1).astype(jnp.float32), (1, _H2))
    b3r = _pad_to(b3.reshape(1, -1).astype(jnp.float32), (1, _NO))
    return (w1t, b1r, w2t, b2r, w3t, b3r)


@functools.partial(jax.jit, static_argnames=("tile_b",))
def image_classifier_forward(images, prepared, *, tile_b=None):
    """images: (B, 1, 28, 28) float32 (NCHW). Returns (B, 10) float32 logits."""
    w1t, b1r, w2t, b2r, w3t, b3r = prepared
    compute_dtype = w1t.dtype
    B = images.shape[0]
    x = images.reshape(B, _IN).astype(compute_dtype)  # same as torch .view(-1, 784)

    # Tile-size choice: keep a single (small) tile for tiny batches, cap at
    # _TILE_B_MAX for large ones. Always a multiple of 8 (sublane alignment).
    if tile_b is None:
        tile_b = min(_TILE_B_MAX, _round_up(max(B, 8), 8))
    tile_b = _round_up(tile_b, 8)

    num_tiles = pl.cdiv(B, tile_b)
    Bp = num_tiles * tile_b
    if Bp != B:
        x = jnp.pad(x, ((0, Bp - B), (0, 0)))  # ragged last tile -> zero rows

    out = pl.pallas_call(
        _mlp_kernel,
        out_shape=jax.ShapeDtypeStruct((Bp, _NO), jnp.float32),
        grid=(num_tiles,),
        in_specs=[
            pl.BlockSpec((tile_b, _IN), lambda i: (i, 0)),   # activations: tiled
            pl.BlockSpec((_IN, _H1), lambda i: (0, 0)),      # weights/biases:
            pl.BlockSpec((1, _H1), lambda i: (0, 0)),        # resident across
            pl.BlockSpec((_H1, _H2), lambda i: (0, 0)),      # grid steps
            pl.BlockSpec((1, _H2), lambda i: (0, 0)),
            pl.BlockSpec((_H2, _NO), lambda i: (0, 0)),
            pl.BlockSpec((1, _NO), lambda i: (0, 0)),
        ],
        out_specs=pl.BlockSpec((tile_b, _NO), lambda i: (i, 0)),
        compiler_params=pltpu.CompilerParams(
            dimension_semantics=("parallel",),  # megacore-shard batch on v7x
        ),
    )(x, w1t, b1r, w2t, b2r, w3t, b3r)

    return out[:B, :10]


def make_params(key):
    """Deterministic synthetic parameters, PyTorch Linear layout: W (out, in), b (out,)."""
    ks = jax.random.split(key, 6)

    def lin(kw, kb, fan_in, fan_out):
        bound = 1.0 / jnp.sqrt(fan_in)
        w = jax.random.uniform(kw, (fan_out, fan_in), jnp.float32, -bound, bound)
        b = jax.random.uniform(kb, (fan_out,), jnp.float32, -bound, bound)
        return w, b

    w1, b1 = lin(ks[0], ks[1], 784, 300)
    w2, b2 = lin(ks[2], ks[3], 300, 200)
    w3, b3 = lin(ks[4], ks[5], 200, 10)
    return (w1, b1, w2, b2, w3, b3)


def _reference(images, params):
    w1, b1, w2, b2, w3, b3 = params
    x = images.reshape(-1, 784)
    x = jax.nn.sigmoid(x @ w1.T + b1)
    x = jax.nn.sigmoid(x @ w2.T + b2)
    return x @ w3.T + b3


if __name__ == "__main__":
    key = jax.random.PRNGKey(0)
    k_img, k_par, k_big = jax.random.split(key, 3)

    params = make_params(k_par)

    # Small MNIST-like batch (NCHW), as the PyTorch module expects.
    images = jax.random.normal(k_img, (8, 1, 28, 28), jnp.float32)
    ref = _reference(images, params)

    # 1) f32 compute path: bit-accurate vs. JAX reference.
    prep_f32 = prepare_params(params, compute_dtype=jnp.float32)
    out_f32 = jax.block_until_ready(image_classifier_forward(images, prep_f32))
    assert out_f32.shape == (8, 10) and out_f32.dtype == jnp.float32
    assert jnp.allclose(out_f32, ref, atol=1e-5, rtol=1e-5), "f32 mismatch vs reference"

    # 2) bf16-operand performance path (f32 accumulation): loose tolerance.
    prep_bf16 = prepare_params(params, compute_dtype=jnp.bfloat16)
    out_bf16 = jax.block_until_ready(image_classifier_forward(images, prep_bf16))
    assert out_bf16.shape == (8, 10) and out_bf16.dtype == jnp.float32
    assert jnp.allclose(out_bf16, ref, atol=3e-2, rtol=3e-2), "bf16 mismatch vs reference"

    # 3) Exercise the batch grid with a multi-step grid and a ragged last tile.
    images_big = jax.random.normal(k_big, (600, 1, 28, 28), jnp.float32)
    ref_big = _reference(images_big, params)
    out_big = jax.block_until_ready(
        image_classifier_forward(images_big, prep_bf16, tile_b=256))
    assert out_big.shape == (600, 10)
    assert jnp.allclose(out_big, ref_big, atol=3e-2, rtol=3e-2), "grid/ragged mismatch"

    print("KERNEL_OK")
</pallas_src>

<mosaic_0001>
module attributes {stable_mosaic.version = 11 : i64} {
  func.func @_mlp_kernel(%arg0: i32, %arg1: memref<8x784xf32, #tpu.memory_space<vmem>>, %arg2: memref<784x384xf32, #tpu.memory_space<vmem>>, %arg3: memref<1x384xf32, #tpu.memory_space<vmem>>, %arg4: memref<384x256xf32, #tpu.memory_space<vmem>>, %arg5: memref<1x256xf32, #tpu.memory_space<vmem>>, %arg6: memref<256x128xf32, #tpu.memory_space<vmem>>, %arg7: memref<1x128xf32, #tpu.memory_space<vmem>>, %arg8: memref<8x128xf32, #tpu.memory_space<vmem>>) attributes {dimension_semantics = [#tpu.dimension_semantics<parallel>], iteration_bounds = array<i64: 1>, scalar_prefetch = 0 : i64, scratch_operands = 0 : i64, tpu.core_type = #tpu.core_type<tc>, window_params = [{transform_indices = @transform_0, window_bounds = array<i64: 8, 784>}, {pipeline_mode = #tpu.pipeline_mode<synchronous>, transform_indices = @transform_1, window_bounds = array<i64: 784, 384>}, {pipeline_mode = #tpu.pipeline_mode<synchronous>, transform_indices = @transform_2, window_bounds = array<i64: 1, 384>}, {pipeline_mode = #tpu.pipeline_mode<synchronous>, transform_indices = @transform_3, window_bounds = array<i64: 384, 256>}, {pipeline_mode = #tpu.pipeline_mode<synchronous>, transform_indices = @transform_4, window_bounds = array<i64: 1, 256>}, {pipeline_mode = #tpu.pipeline_mode<synchronous>, transform_indices = @transform_5, window_bounds = array<i64: 256, 128>}, {pipeline_mode = #tpu.pipeline_mode<synchronous>, transform_indices = @transform_6, window_bounds = array<i64: 1, 128>}, {transform_indices = @transform_7, window_bounds = array<i64: 8, 128>}]} {
    %c0 = arith.constant 0 : index
    %c0_0 = arith.constant 0 : index
    %0 = vector.load %arg1[%c0, %c0_0] : memref<8x784xf32, #tpu.memory_space<vmem>>, vector<8x784xf32>
    %c0_1 = arith.constant 0 : index
    %c0_2 = arith.constant 0 : index
    %1 = vector.load %arg2[%c0_1, %c0_2] : memref<784x384xf32, #tpu.memory_space<vmem>>, vector<784x384xf32>
    %cst = arith.constant dense<0.000000e+00> : vector<8x384xf32>
    %2 = tpu.matmul %0, %1, %cst {dimension_numbers = #tpu.dot_dimension_numbers<[1], [0], [0], [1], [0, 0, 1, 1], [], []>} : vector<8x784xf32>, vector<784x384xf32>, vector<8x384xf32> -> vector<8x384xf32>
    %c0_3 = arith.constant 0 : index
    %c0_4 = arith.constant 0 : index
    %3 = vector.load %arg3[%c0_3, %c0_4] : memref<1x384xf32, #tpu.memory_space<vmem>>, vector<1x384xf32>
    %4 = vector.broadcast %3 : vector<1x384xf32> to vector<8x384xf32>
    %5 = arith.addf %2, %4 : vector<8x384xf32>
    %6 = arith.negf %5 : vector<8x384xf32>
    %7 = math.exp %6 : vector<8x384xf32>
    %cst_5 = arith.constant 1.000000e+00 : f32
    %8 = vector.broadcast %cst_5 : f32 to vector<8x384xf32>
    %9 = arith.addf %8, %7 : vector<8x384xf32>
    %10 = arith.divf %8, %9 : vector<8x384xf32>
    %c0_6 = arith.constant 0 : index
    %c0_7 = arith.constant 0 : index
    %11 = vector.load %arg4[%c0_6, %c0_7] : memref<384x256xf32, #tpu.memory_space<vmem>>, vector<384x256xf32>
    %cst_8 = arith.constant dense<0.000000e+00> : vector<8x256xf32>
    %12 = tpu.matmul %10, %11, %cst_8 {dimension_numbers = #tpu.dot_dimension_numbers<[1], [0], [0], [1], [0, 0, 1, 1], [], []>} : vector<8x384xf32>, vector<384x256xf32>, vector<8x256xf32> -> vector<8x256xf32>
    %c0_9 = arith.constant 0 : index
    %c0_10 = arith.constant 0 : index
    %13 = vector.load %arg5[%c0_9, %c0_10] : memref<1x256xf32, #tpu.memory_space<vmem>>, vector<1x256xf32>
    %14 = vector.broadcast %13 : vector<1x256xf32> to vector<8x256xf32>
    %15 = arith.addf %12, %14 : vector<8x256xf32>
    %16 = arith.negf %15 : vector<8x256xf32>
    %17 = math.exp %16 : vector<8x256xf32>
    %cst_11 = arith.constant 1.000000e+00 : f32
    %18 = vector.broadcast %cst_11 : f32 to vector<8x256xf32>
    %19 = arith.addf %18, %17 : vector<8x256xf32>
    %20 = arith.divf %18, %19 : vector<8x256xf32>
    %c0_12 = arith.constant 0 : index
    %c0_13 = arith.constant 0 : index
    %21 = vector.load %arg6[%c0_12, %c0_13] : memref<256x128xf32, #tpu.memory_space<vmem>>, vector<256x128xf32>
    %cst_14 = arith.constant dense<0.000000e+00> : vector<8x128xf32>
    %22 = tpu.matmul %20, %21, %cst_14 {dimension_numbers = #tpu.dot_dimension_numbers<[1], [0], [0], [1], [0, 0, 1, 1], [], []>} : vector<8x256xf32>, vector<256x128xf32>, vector<8x128xf32> -> vector<8x128xf32>
    %c0_15 = arith.constant 0 : index
    %c0_16 = arith.constant 0 : index
    %23 = vector.load %arg7[%c0_15, %c0_16] : memref<1x128xf32, #tpu.memory_space<vmem>>, vector<1x128xf32>
    %24 = vector.broadcast %23 : vector<1x128xf32> to vector<8x128xf32>
    %25 = arith.addf %22, %24 : vector<8x128xf32>
    %c0_17 = arith.constant 0 : index
    %c0_18 = arith.constant 0 : index
    %26 = vector.load %arg8[%c0_17, %c0_18] : memref<8x128xf32, #tpu.memory_space<vmem>>, vector<8x128xf32>
    tpu.vector_store %arg8[%c0_17, %c0_18], %25 {strides = array<i32>} : memref<8x128xf32, #tpu.memory_space<vmem>>, vector<8x128xf32>,
    return
  }
  func.func @transform_0(%arg0: i32) -> (i32, i32) {
    %c0_i32 = arith.constant 0 : i32
    %c0_i32_0 = arith.constant 0 : i32
    return %arg0, %c0_i32 : i32, i32
  }
  func.func @transform_1(%arg0: i32) -> (i32, i32) {
    %c0_i32 = arith.constant 0 : i32
    %c0_i32_0 = arith.constant 0 : i32
    %c0_i32_1 = arith.constant 0 : i32
    return %c0_i32, %c0_i32_0 : i32, i32
  }
  func.func @transform_2(%arg0: i32) -> (i32, i32) {
    %c0_i32 = arith.constant 0 : i32
    %c0_i32_0 = arith.constant 0 : i32
    %c0_i32_1 = arith.constant 0 : i32
    return %c0_i32, %c0_i32_0 : i32, i32
  }
  func.func @transform_3(%arg0: i32) -> (i32, i32) {
    %c0_i32 = arith.constant 0 : i32
    %c0_i32_0 = arith.constant 0 : i32
    %c0_i32_1 = arith.constant 0 : i32
    return %c0_i32, %c0_i32_0 : i32, i32
  }
  func.func @transform_4(%arg0: i32) -> (i32, i32) {
    %c0_i32 = arith.constant 0 : i32
    %c0_i32_0 = arith.constant 0 : i32
    %c0_i32_1 = arith.constant 0 : i32
    return %c0_i32, %c0_i32_0 : i32, i32
  }
  func.func @transform_5(%arg0: i32) -> (i32, i32) {
    %c0_i32 = arith.constant 0 : i32
    %c0_i32_0 = arith.constant 0 : i32
    %c0_i32_1 = arith.constant 0 : i32
    return %c0_i32, %c0_i32_0 : i32, i32
  }
  func.func @transform_6(%arg0: i32) -> (i32, i32) {
    %c0_i32 = arith.constant 0 : i32
    %c0_i32_0 = arith.constant 0 : i32
    %c0_i32_1 = arith.constant 0 : i32
    return %c0_i32, %c0_i32_0 : i32, i32
  }
  func.func @transform_7(%arg0: i32) -> (i32, i32) {
    %c0_i32 = arith.constant 0 : i32
    %c0_i32_0 = arith.constant 0 : i32
    return %arg0, %c0_i32 : i32, i32
  }
}

</mosaic_0001>

<bundles_post_ra>
// kernel: image_classifier_forward.1
= control target key start
LH: loop header
LB: loop body
LE: loop exit
PB: predicated region body
PF: predicated region fallthrough
CT: control target
= control target key end

     0   :  { %12 = vsyncpa [#allocation3], 0  ;;  %s1620_s0 = inlined_call_operand.vmem [shape: f32[8,784], index: 0, kind: input, shape index: {}]   ;;  %s1621_s1 = inlined_call_operand.hbm [shape: f32[784,384], index: 1, kind: input, shape index: {}]   ;;  %s1622_s2 = inlined_call_operand.hbm [shape: f32[1,384], index: 2, kind: input, shape index: {}]   ;;  %s1623_s3 = inlined_call_operand.hbm [shape: f32[384,256], index: 3, kind: input, shape index: {}]   ;;  %s1624_s4 = inlined_call_operand.hbm [shape: f32[1,256], index: 4, kind: input, shape index: {}]   ;;  %s1625_s5 = inlined_call_operand.hbm [shape: f32[256,128], index: 5, kind: input, shape index: {}]   ;;  %s1626_s6 = inlined_call_operand.hbm [shape: f32[1,128], index: 6, kind: input, shape index: {}]   ;;  %s1627_s7 = inlined_call_operand.hbm [shape: f32[8,128], index: 7, kind: output, shape index: {}]  }
   0x1   :  { %13 = vsyncpa [#allocation6], 0 }
   0x2   :  { %14 = vsyncpa [#allocation9], 0 }
   0x3   :  { %15 = vsyncpa [#allocation12], 0  ;;  %s37_s26 = sshll.u32 %s1622_s2, 4  ;;  %s38_s26 = int_to_ptr.hbm [resolvable:$true] %s37_s26 }
   0x4   :  { %16 = vsyncpa [#allocation4], 0  ;;  %s1482_s27 = smov [#allocation5]   ;;  %s61_s8 = sshll.u32 %s1624_s4, 4  ;;  %s62_s8 = int_to_ptr.hbm [resolvable:$true] %s61_s8 }
   0x5   :  { %s39_s28 = sshll.u32 %s1482_s27, 4  ;;  %s1483_s9 = smov [#allocation8]   ;;  %s40_s28 = int_to_ptr.vmem [resolvable:$true] %s39_s28 }
   0x6   :  { %42 = dma.hbm_to_vmem [thread:$0]  %s38_s26, 48, %s40_s28, [#allocation6]  }
   0x7   :  { %s63_s10 = sshll.u32 %s1483_s9, 4  ;;  %s23_s13 = sshll.u32 %s1621_s1, 4  ;;  %s64_s10 = int_to_ptr.vmem [resolvable:$true] %s63_s10  ;;  %s24_s13 = int_to_ptr.hbm [resolvable:$true] %s23_s13 }
   0x8   :  { %66 = dma.hbm_to_vmem [thread:$0]  %s62_s8, 32, %s64_s10, [#allocation9]  }
   0x9   :  { %s1484_s2 = smov [#allocation2]   ;;  %s47_s17 = sshll.u32 %s1623_s3, 4  ;;  %s48_s17 = int_to_ptr.hbm [resolvable:$true] %s47_s17 }
   0xa   :  { %s25_s14 = sshll.u32 %s1484_s2, 4  ;;  %s1485_s18 = smov 384   ;;  %s26_s14 = int_to_ptr.vmem [resolvable:$true] %s25_s14 }
   0xb   :  { %s1486_s4 = smov 24   ;;  %s1487_s19 = smov [#allocation7]  }
   0xc   :  { %31 = dma.hbm_to_vmem [thread:$0]  %s24_s13, 37632, %s26_s14, [#allocation3], %s1485_s18, %s1485_s18, %s1486_s4  }
   0xd   :  { %s49_s20 = sshll.u32 %s1487_s19, 4  ;;  %s1488_s21 = smov 256   ;;  %s50_s20 = int_to_ptr.vmem [resolvable:$true] %s49_s20 }
   0xe   :  { %s1489_s22 = smov 16   ;;  %s71_s24 = sshll.u32 %s1625_s5, 4  ;;  %s72_s24 = int_to_ptr.hbm [resolvable:$true] %s71_s24 }
   0xf   :  { %55 = dma.hbm_to_vmem [thread:$0]  %s48_s17, 12288, %s50_s20, [#allocation6], %s1488_s21, %s1488_s21, %s1489_s22  }
  0x10   :  { %s1490_s25 = smov [#allocation10]   ;;  %s85_s28 = sshll.u32 %s1626_s6, 4  ;;  %s86_s28 = int_to_ptr.hbm [resolvable:$true] %s85_s28 }
  0x11   :  { %s73_s26 = sshll.u32 %s1490_s25, 4  ;;  %s1491_s29 = smov 128   ;;  %s74_s26 = int_to_ptr.vmem [resolvable:$true] %s73_s26 }
  0x12   :  { %s1492_s30 = smov 8   ;;  %s1493_s8 = smov [#allocation11]  }
  0x13   :  { %79 = dma.hbm_to_vmem [thread:$0]  %s72_s24, 4096, %s74_s26, [#allocation9], %s1491_s29, %s1491_s29, %s1492_s30  }
  0x14   :  { %s87_s9 = sshll.u32 %s1493_s8, 4  ;;  %s88_s9 = int_to_ptr.vmem [resolvable:$true] %s87_s9 }
  0x15   :  { %90 = dma.hbm_to_vmem [thread:$0]  %s86_s28, 16, %s88_s9, [#allocation12]  }
  0x16   :  { %1472 = dma.done.wait [#allocation3], 37632  }
  0x17   :  { %1473 = vsyncadd [#allocation3], 4294929664 }
  0x18   :  { %1474 = dma.done.wait [#allocation6], 12336  }
  0x19   :  { %1475 = vsyncadd [#allocation6], 4294954960 }
  0x1a   :  { %1476 = dma.done.wait [#allocation9], 4128  }
  0x1b   :  { %1477 = vsyncadd [#allocation9], 4294963168 }
  0x1c   :  { %1478 = dma.done.wait [#allocation12], 16  }
  0x1d   :  { %1479 = vsyncadd [#allocation12], 4294967280  ;;  %v167_v0 = vld [vmem:[#allocation2 + $0x168] sm:$0xff]  ;;  %v164_v3 = vld [vmem:[#allocation2 + $0x150] sm:$0xff]  ;;  %vm424_vm0 = vcmask 130048   ;;  %s1249_s1 = sshll.u32 %s1627_s7, 4  ;;  %s1250_s1 = int_to_ptr.hbm [resolvable:$true] %s1249_s1 }
  0x1e   :  { %v263_v1 = vld [vmem:[#allocation2 + $0x468] sm:$0xff]  ;;  %428 = vmatpush.msra.mxu0 %v167_v0  ;;  %v260_v5 = vld [vmem:[#allocation2 + $0x450] sm:$0xff]  ;;  %v161_v7 = vld [vmem:[#allocation2 + $0x138] sm:$0xff] }
  0x1f   :  { %v311_v2 = vld [vmem:[#allocation2 + $0x5e8] sm:$0xff]  ;;  %468 = vmatpush.msra.mxu2 %v263_v1  ;;  %v308_v6 = vld [vmem:[#allocation2 + $0x5d0] sm:$0xff]  ;;  %v257_v9 = vld [vmem:[#allocation2 + $0x438] sm:$0xff] }
  0x20   :  { %v215_v4 = vld [vmem:[#allocation2 + $0x2e8] sm:$0xff]  ;;  %488 = vmatpush.msra.mxu3 %v311_v2  ;;  %v212_v8 = vld [vmem:[#allocation2 + $0x2d0] sm:$0xff]  ;;  %429 = vmatpush.msra.mxu0 %v164_v3  ;;  %v305_v10 = vld [vmem:[#allocation2 + $0x5b8] sm:$0xff] }
  0x21   :  { %448 = vmatpush.msra.mxu1 %v215_v4  ;;  %469 = vmatpush.msra.mxu2 %v260_v5  ;;  %v158_v11 = vld [vmem:[#allocation2 + $0x120] sm:$0xff]  ;;  %v209_v12 = vld [vmem:[#allocation2 + $0x2b8] sm:$0xff]  ;;  %v155_v16 = vld [vmem:[#allocation2 + $0x108] sm:$0xff] }
  0x22   :  { %489 = vmatpush.msra.mxu3 %v308_v6  ;;  %v254_v13 = vld [vmem:[#allocation2 + $0x420] sm:$0xff]  ;;  %430 = vmatpush.msra.mxu0 %v161_v7  ;;  %v251_v17 = vld [vmem:[#allocation2 + $0x408] sm:$0xff]  ;;  %v152_v20 = vld [vmem:[#allocation2 + $0xf0] sm:$0xff] }
  0x23   :  { %449 = vmatpush.msra.mxu1 %v212_v8  ;;  %470 = vmatpush.msra.mxu2 %v257_v9  ;;  %v302_v14 = vld [vmem:[#allocation2 + $0x5a0] sm:$0xff]  ;;  %v299_v18 = vld [vmem:[#allocation2 + $0x588] sm:$0xff]  ;;  %v248_v21 = vld [vmem:[#allocation2 + $0x3f0] sm:$0xff] }
  0x24   :  { %v206_v15 = vld [vmem:[#allocation2 + $0x2a0] sm:$0xff]  ;;  %490 = vmatpush.msra.mxu3 %v305_v10  ;;  %431 = vmatpush.msra.mxu0 %v158_v11  ;;  %v203_v19 = vld [vmem:[#allocation2 + $0x288] sm:$0xff]  ;;  %v296_v22 = vld [vmem:[#allocation2 + $0x570] sm:$0xff] }
  0x25   :  { %450 = vmatpush.msra.mxu1 %v209_v12  ;;  %471 = vmatpush.msra.mxu2 %v254_v13  ;;  %v200_v23 = vld [vmem:[#allocation2 + $0x270] sm:$0xff]  ;;  %v149_v24 = vld [vmem:[#allocation2 + $0xd8] sm:$0xff]  ;;  %v146_v28 = vld [vmem:[#allocation2 + $0xc0] sm:$0xff] }
  0x26   :  { %491 = vmatpush.msra.mxu3 %v302_v14  ;;  %432 = vmatpush.msra.mxu0 %v155_v16  ;;  %v245_v25 = vld [vmem:[#allocation2 + $0x3d8] sm:$0xff]  ;;  %v242_v29 = vld [vmem:[#allocation2 + $0x3c0] sm:$0xff]  ;;  %v143_v32 = vld [vmem:[#allocation2 + $0xa8] sm:$0xff] }
  0x27   :  { %451 = vmatpush.msra.mxu1 %v206_v15  ;;  %472 = vmatpush.msra.mxu2 %v251_v17  ;;  %v293_v26 = vld [vmem:[#allocation2 + $0x558] sm:$0xff]  ;;  %v290_v30 = vld [vmem:[#allocation2 + $0x540] sm:$0xff]  ;;  %v239_v33 = vld [vmem:[#allocation2 + $0x3a8] sm:$0xff] }
  0x28   :  { %492 = vmatpush.msra.mxu3 %v299_v18  ;;  %433 = vmatpush.msra.mxu0 %v152_v20  ;;  %v197_v27 = vld [vmem:[#allocation2 + $0x258] sm:$0xff]  ;;  %v194_v31 = vld [vmem:[#allocation2 + $0x240] sm:$0xff]  ;;  %v287_v34 = vld [vmem:[#allocation2 + $0x528] sm:$0xff] }
  0x29   :  { %452 = vmatpush.msra.mxu1 %v203_v19  ;;  %473 = vmatpush.msra.mxu2 %v248_v21  ;;  %v191_v35 = vld [vmem:[#allocation2 + $0x228] sm:$0xff]  ;;  %v140_v36 = vld [vmem:[#allocation2 + $0x90] sm:$0xff]  ;;  %v137_v40 = vld [vmem:[#allocation2 + $0x78] sm:$0xff] }
  0x2a   :  { %493 = vmatpush.msra.mxu3 %v296_v22  ;;  %434 = vmatpush.msra.mxu0 %v149_v24  ;;  %v236_v37 = vld [vmem:[#allocation2 + $0x390] sm:$0xff]  ;;  %v233_v41 = vld [vmem:[#allocation2 + $0x378] sm:$0xff]  ;;  %v134_v44 = vld [vmem:[#allocation2 + $0x60] sm:$0xff] }
  0x2b   :  { %453 = vmatpush.msra.mxu1 %v200_v23  ;;  %474 = vmatpush.msra.mxu2 %v245_v25  ;;  %v284_v38 = vld [vmem:[#allocation2 + $0x510] sm:$0xff]  ;;  %v281_v42 = vld [vmem:[#allocation2 + $0x4f8] sm:$0xff]  ;;  %v230_v45 = vld [vmem:[#allocation2 + $0x360] sm:$0xff] }
  0x2c   :  { %494 = vmatpush.msra.mxu3 %v293_v26  ;;  %435 = vmatpush.msra.mxu0 %v146_v28  ;;  %v188_v39 = vld [vmem:[#allocation2 + $0x210] sm:$0xff]  ;;  %v185_v43 = vld [vmem:[#allocation2 + $0x1f8] sm:$0xff]  ;;  %v278_v46 = vld [vmem:[#allocation2 + $0x4e0] sm:$0xff] }
  0x2d   :  { %454 = vmatpush.msra.mxu1 %v197_v27  ;;  %475 = vmatpush.msra.mxu2 %v242_v29  ;;  %v182_v47 = vld [vmem:[#allocation2 + $0x1e0] sm:$0xff]  ;;  %v131_v48 = vld [vmem:[#allocation2 + $0x48] sm:$0xff]  ;;  %v128_v52 = vld [vmem:[#allocation2 + $0x30] sm:$0xff] }
  0x2e   :  { %495 = vmatpush.msra.mxu3 %v290_v30  ;;  %436 = vmatpush.msra.mxu0 %v143_v32  ;;  %v227_v49 = vld [vmem:[#allocation2 + $0x348] sm:$0xff]  ;;  %v224_v53 = vld [vmem:[#allocation2 + $0x330] sm:$0xff]  ;;  %v125_v56 = vld [vmem:[#allocation2 + $0x18] sm:$0xff] }
  0x2f   :  { %455 = vmatpush.msra.mxu1 %v194_v31  ;;  %476 = vmatpush.msra.mxu2 %v239_v33  ;;  %v275_v50 = vld [vmem:[#allocation2 + $0x4c8] sm:$0xff]  ;;  %v272_v54 = vld [vmem:[#allocation2 + $0x4b0] sm:$0xff]  ;;  %v221_v57 = vld [vmem:[#allocation2 + $0x318] sm:$0xff] }
  0x30   :  { %496 = vmatpush.msra.mxu3 %v287_v34  ;;  %437 = vmatpush.msra.mxu0 %v140_v36  ;;  %v179_v51 = vld [vmem:[#allocation2 + $0x1c8] sm:$0xff]  ;;  %v176_v55 = vld [vmem:[#allocation2 + $0x1b0] sm:$0xff]  ;;  %v269_v58 = vld [vmem:[#allocation2 + $0x498] sm:$0xff] }
  0x31   :  { %456 = vmatpush.msra.mxu1 %v191_v35  ;;  %477 = vmatpush.msra.mxu2 %v236_v37  ;;  %v173_v59 = vld [vmem:[#allocation2 + $0x198] sm:$0xff]  ;;  %v122_v60 = vld [vmem:[#allocation2] sm:$0xff]  ;;  %v359_v63 = vld [vmem:[#allocation2 + $0x768] sm:$0xff] }
  0x32   :  { %497 = vmatpush.msra.mxu3 %v284_v38  ;;  %438 = vmatpush.msra.mxu0 %v137_v40  ;;  %v218_v61 = vld [vmem:[#allocation2 + $0x300] sm:$0xff]  ;;  %v413_v0 = vld [vmem:[#allocation2 + $0x918] sm:$0xff]  ;;  %v168_v1 = vld [vmem:[#allocation2 + $0x170] sm:$0xff] }
  0x33   :  { %457 = vmatpush.msra.mxu1 %v188_v39  ;;  %478 = vmatpush.msra.mxu2 %v233_v41  ;;  %v266_v62 = vld [vmem:[#allocation2 + $0x480] sm:$0xff]  ;;  %v356_v3 = vld [vmem:[#allocation2 + $0x750] sm:$0xff]  ;;  %v407_v4 = vld [vmem:[#allocation2 + $0x8e8] sm:$0xff] }
  0x34   :  { %498 = vmatpush.msra.mxu3 %v281_v42  ;;  %439 = vmatpush.msra.mxu0 %v134_v44  ;;  %v170_v2 = vld [vmem:[#allocation2 + $0x180] sm:$0xff]  ;;  %v165_v6 = vld [vmem:[#allocation2 + $0x158] sm:$0xff]  ;;  %v1556_v7 = vld [vmem:[%s1620_s0 + $0x10] sm:$0xff] }
  0x35   :  { %458 = vmatpush.msra.mxu1 %v185_v43  ;;  %479 = vmatpush.msra.mxu2 %v230_v45  ;;  %v410_v5 = vld [vmem:[#allocation2 + $0x900] sm:$0xff]  ;;  %v216_v8 = vld [vmem:[#allocation2 + $0x2f0] sm:$0xff]  ;;  %v353_v9 = vld [vmem:[#allocation2 + $0x738] sm:$0xff] }
  0x36   :  { %499 = vmatpush.msra.mxu3 %v278_v46  ;;  %440 = vmatpush.msra.mxu0 %v131_v48  ;;  %v404_v10 = vld [vmem:[#allocation2 + $0x8d0] sm:$0xff]  ;;  %v162_v11 = vld [vmem:[#allocation2 + $0x140] sm:$0xff]  ;;  %v213_v12 = vld [vmem:[#allocation2 + $0x2d8] sm:$0xff] }
  0x37   :  { %459 = vmatpush.msra.mxu1 %v182_v47  ;;  %480 = vmatpush.msra.mxu2 %v227_v49  ;;  %v350_v13 = vld [vmem:[#allocation2 + $0x720] sm:$0xff]  ;;  %v401_v14 = vld [vmem:[#allocation2 + $0x8b8] sm:$0xff]  ;;  %v159_v15 = vld [vmem:[#allocation2 + $0x128] sm:$0xff] }
  0x38   :  { %500 = vmatpush.msra.mxu3 %v275_v50  ;;  %441 = vmatpush.msra.mxu0 %v128_v52  ;;  %v210_v16 = vld [vmem:[#allocation2 + $0x2c0] sm:$0xff]  ;;  %v347_v17 = vld [vmem:[#allocation2 + $0x708] sm:$0xff]  ;;  %v156_v19 = vld [vmem:[#allocation2 + $0x110] sm:$0xff] }
  0x39   :  { %460 = vmatpush.msra.mxu1 %v179_v51  ;;  %481 = vmatpush.msra.mxu2 %v224_v53  ;;  %v398_v18 = vld [vmem:[#allocation2 + $0x8a0] sm:$0xff]  ;;  %v207_v20 = vld [vmem:[#allocation2 + $0x2a8] sm:$0xff]  ;;  %v344_v21 = vld [vmem:[#allocation2 + $0x6f0] sm:$0xff] }
  0x3a   :  { %501 = vmatpush.msra.mxu3 %v272_v54  ;;  %442 = vmatpush.msra.mxu0 %v125_v56  ;;  %v395_v22 = vld [vmem:[#allocation2 + $0x888] sm:$0xff]  ;;  %v153_v23 = vld [vmem:[#allocation2 + $0xf8] sm:$0xff]  ;;  %v204_v24 = vld [vmem:[#allocation2 + $0x290] sm:$0xff] }
  0x3b   :  { %461 = vmatpush.msra.mxu1 %v176_v55  ;;  %482 = vmatpush.msra.mxu2 %v221_v57  ;;  %v341_v25 = vld [vmem:[#allocation2 + $0x6d8] sm:$0xff]  ;;  %v392_v26 = vld [vmem:[#allocation2 + $0x870] sm:$0xff]  ;;  %v150_v27 = vld [vmem:[#allocation2 + $0xe0] sm:$0xff] }
  0x3c   :  { %502 = vmatpush.msra.mxu3 %v269_v58  ;;  %443 = vmatpush.msra.mxu0 %v122_v60  ;;  %v201_v28 = vld [vmem:[#allocation2 + $0x278] sm:$0xff]  ;;  %v338_v29 = vld [vmem:[#allocation2 + $0x6c0] sm:$0xff]  ;;  %v147_v31 = vld [vmem:[#allocation2 + $0xc8] sm:$0xff] }
  0x3d   :  { %462 = vmatpush.msra.mxu1 %v173_v59  ;;  %483 = vmatpush.msra.mxu2 %v218_v61  ;;  %v389_v30 = vld [vmem:[#allocation2 + $0x858] sm:$0xff]  ;;  %v198_v32 = vld [vmem:[#allocation2 + $0x260] sm:$0xff]  ;;  %v335_v33 = vld [vmem:[#allocation2 + $0x6a8] sm:$0xff] }
  0x3e   :  { %503 = vmatpush.msra.mxu3 %v266_v62  ;;  %508 = vmatpush.msrb.mxu0 %v359_v63  ;;  %v386_v34 = vld [vmem:[#allocation2 + $0x840] sm:$0xff]  ;;  %v144_v35 = vld [vmem:[#allocation2 + $0xb0] sm:$0xff]  ;;  %v195_v36 = vld [vmem:[#allocation2 + $0x248] sm:$0xff] }
  0x3f   :  { %562 = vmatpush.msrb.mxu2 %v413_v0  ;;  %463 = vmatpush.msra.mxu1 %v170_v2  ;;  %v332_v37 = vld [vmem:[#allocation2 + $0x690] sm:$0xff]  ;;  %v383_v38 = vld [vmem:[#allocation2 + $0x828] sm:$0xff]  ;;  %v141_v39 = vld [vmem:[#allocation2 + $0x98] sm:$0xff] }
  0x40   :  { %568 = vmatpush.msrb.mxu3 %v168_v1  ;;  %509 = vmatpush.msrb.mxu0 %v356_v3  ;;  %v192_v40 = vld [vmem:[#allocation2 + $0x230] sm:$0xff]  ;;  %v329_v41 = vld [vmem:[#allocation2 + $0x678] sm:$0xff]  ;;  %v138_v43 = vld [vmem:[#allocation2 + $0x80] sm:$0xff] }
  0x41   :  { %528 = vmatpush.msrb.mxu1 %v407_v4  ;;  %563 = vmatpush.msrb.mxu2 %v410_v5  ;;  %v380_v42 = vld [vmem:[#allocation2 + $0x810] sm:$0xff]  ;;  %v189_v44 = vld [vmem:[#allocation2 + $0x218] sm:$0xff]  ;;  %v326_v45 = vld [vmem:[#allocation2 + $0x660] sm:$0xff] }
  0x42   :  { %569 = vmatpush.msrb.mxu3 %v165_v6  ;;  %484 = vmatmul.f32.vlgmr.msra.gmra.mxu2 %v1556_v7  ;;  %v377_v46 = vld [vmem:[#allocation2 + $0x7f8] sm:$0xff]  ;;  %v135_v47 = vld [vmem:[#allocation2 + $0x68] sm:$0xff]  ;;  %v1562_v48 = vld [vmem:[%s1620_s0] sm:$0xff] }
  0x43   :  { %588 = vmatpush.msra.mxu2 %v216_v8  ;;  %510 = vmatpush.msrb.mxu0 %v353_v9  ;;  %v1567_v49 = vld [vmem:[%s1620_s0 + $0x18] sm:$0xff]  ;;  %v186_v50 = vld [vmem:[#allocation2 + $0x200] sm:$0xff]  ;;  %v323_v51 = vld [vmem:[#allocation2 + $0x648] sm:$0xff] }
  0x44   :  { %529 = vmatpush.msrb.mxu1 %v404_v10  ;;  %570 = vmatpush.msrb.mxu3 %v162_v11  ;;  %v374_v52 = vld [vmem:[#allocation2 + $0x7e0] sm:$0xff]  ;;  %v132_v53 = vld [vmem:[#allocation2 + $0x50] sm:$0xff]  ;;  %v1574_v54 = vld [vmem:[%s1620_s0 + $0x8] sm:$0xff] }
  0x45   :  { %589 = vmatpush.msra.mxu2 %v213_v12  ;;  %511 = vmatpush.msrb.mxu0 %v350_v13  ;;  %v183_v55 = vld [vmem:[#allocation2 + $0x1e8] sm:$0xff]  ;;  %v320_v56 = vld [vmem:[#allocation2 + $0x630] sm:$0xff]  ;;  %v129_v58 = vld [vmem:[#allocation2 + $0x38] sm:$0xff] }
  0x46   :  { %530 = vmatpush.msrb.mxu1 %v401_v14  ;;  %571 = vmatpush.msrb.mxu3 %v159_v15  ;;  %v371_v57 = vld [vmem:[#allocation2 + $0x7c8] sm:$0xff]  ;;  %v180_v59 = vld [vmem:[#allocation2 + $0x1d0] sm:$0xff]  ;;  %v317_v60 = vld [vmem:[#allocation2 + $0x618] sm:$0xff] }
  0x47   :  { %590 = vmatpush.msra.mxu2 %v210_v16  ;;  %512 = vmatpush.msrb.mxu0 %v347_v17  ;;  %v368_v61 = vld [vmem:[#allocation2 + $0x7b0] sm:$0xff]  ;;  %v126_v62 = vld [vmem:[#allocation2 + $0x20] sm:$0xff]  ;;  %v177_v0 = vld [vmem:[#allocation2 + $0x1b8] sm:$0xff] }
  0x48   :  { %531 = vmatpush.msrb.mxu1 %v398_v18  ;;  %572 = vmatpush.msrb.mxu3 %v156_v19  ;;  %v1580_v63 = vld [vmem:[%s1620_s0 + $0x30] sm:$0xff]  ;;  %v314_v1 = vld [vmem:[#allocation2 + $0x600] sm:$0xff]  ;;  %v365_v2 = vld [vmem:[#allocation2 + $0x798] sm:$0xff] }
  0x49   :  { %591 = vmatpush.msra.mxu2 %v207_v20  ;;  %513 = vmatpush.msrb.mxu0 %v344_v21  ;;  %v123_v3 = vld [vmem:[#allocation2 + $0x8] sm:$0xff]  ;;  %v1587_v4 = vld [vmem:[%s1620_s0 + $0x20] sm:$0xff]  ;;  %v360_v6 = vld [vmem:[#allocation2 + $0x770] sm:$0xff] }
  0x4a   :  { %532 = vmatpush.msrb.mxu1 %v395_v22  ;;  %573 = vmatpush.msrb.mxu3 %v153_v23  ;;  %v174_v5 = vld [vmem:[#allocation2 + $0x1a0] sm:$0xff]  ;;  %v1592_v9 = vld [vmem:[%s1620_s0 + $0x28] sm:$0xff]  ;;  %v357_v11 = vld [vmem:[#allocation2 + $0x758] sm:$0xff]  ;;  %s1494_s0 = smov [#allocation13]  }
  0x4b   :  { %592 = vmatpush.msra.mxu2 %v204_v24  ;;  %514 = vmatpush.msrb.mxu0 %v341_v25  ;;  %v362_v8 = vld [vmem:[#allocation2 + $0x780] sm:$0xff]  ;;  %v171_v10 = vld [vmem:[#allocation2 + $0x188] sm:$0xff]  ;;  %v264_v12 = vld [vmem:[#allocation2 + $0x470] sm:$0xff]  ;;  %s1247_s20 = sshll.u32 %s1494_s0, 4  ;;  %s1248_s20 = int_to_ptr.vmem [resolvable:$true] %s1247_s20 }
  0x4c   :  { %533 = vmatpush.msrb.mxu1 %v392_v26  ;;  %574 = vmatpush.msrb.mxu3 %v150_v27  ;;  %v408_v13 = vld [vmem:[#allocation2 + $0x8f0] sm:$0xff]  ;;  %v354_v15 = vld [vmem:[#allocation2 + $0x740] sm:$0xff]  ;;  %v261_v16 = vld [vmem:[#allocation2 + $0x458] sm:$0xff] }
  0x4d   :  { %593 = vmatpush.msra.mxu2 %v201_v28  ;;  %515 = vmatpush.msrb.mxu0 %v338_v29  ;;  %v312_v14 = vld [vmem:[#allocation2 + $0x5f0] sm:$0xff]  ;;  %v405_v17 = vld [vmem:[#allocation2 + $0x8d8] sm:$0xff]  ;;  %v351_v19 = vld [vmem:[#allocation2 + $0x728] sm:$0xff] }
  0x4e   :  { %534 = vmatpush.msrb.mxu1 %v389_v30  ;;  %575 = vmatpush.msrb.mxu3 %v147_v31  ;;  %v309_v18 = vld [vmem:[#allocation2 + $0x5d8] sm:$0xff]  ;;  %v258_v20 = vld [vmem:[#allocation2 + $0x440] sm:$0xff]  ;;  %v348_v23 = vld [vmem:[#allocation2 + $0x710] sm:$0xff] }
  0x4f   :  { %594 = vmatpush.msra.mxu2 %v198_v32  ;;  %516 = vmatpush.msrb.mxu0 %v335_v33  ;;  %v402_v21 = vld [vmem:[#allocation2 + $0x8c0] sm:$0xff]  ;;  %v255_v24 = vld [vmem:[#allocation2 + $0x428] sm:$0xff]  ;;  %v345_v27 = vld [vmem:[#allocation2 + $0x6f8] sm:$0xff] }
  0x50   :  { %535 = vmatpush.msrb.mxu1 %v386_v34  ;;  %576 = vmatpush.msrb.mxu3 %v144_v35  ;;  %v306_v22 = vld [vmem:[#allocation2 + $0x5c0] sm:$0xff]  ;;  %v399_v25 = vld [vmem:[#allocation2 + $0x8a8] sm:$0xff]  ;;  %v252_v28 = vld [vmem:[#allocation2 + $0x410] sm:$0xff] }
  0x51   :  { %595 = vmatpush.msra.mxu2 %v195_v36  ;;  %517 = vmatpush.msrb.mxu0 %v332_v37  ;;  %v303_v26 = vld [vmem:[#allocation2 + $0x5a8] sm:$0xff]  ;;  %v396_v29 = vld [vmem:[#allocation2 + $0x890] sm:$0xff]  ;;  %v342_v31 = vld [vmem:[#allocation2 + $0x6e0] sm:$0xff] }
  0x52   :  { %536 = vmatpush.msrb.mxu1 %v383_v38  ;;  %577 = vmatpush.msrb.mxu3 %v141_v39  ;;  %v300_v30 = vld [vmem:[#allocation2 + $0x590] sm:$0xff]  ;;  %v249_v32 = vld [vmem:[#allocation2 + $0x3f8] sm:$0xff]  ;;  %v339_v35 = vld [vmem:[#allocation2 + $0x6c8] sm:$0xff] }
  0x53   :  { %596 = vmatpush.msra.mxu2 %v192_v40  ;;  %518 = vmatpush.msrb.mxu0 %v329_v41  ;;  %v393_v33 = vld [vmem:[#allocation2 + $0x878] sm:$0xff]  ;;  %v246_v36 = vld [vmem:[#allocation2 + $0x3e0] sm:$0xff]  ;;  %v336_v39 = vld [vmem:[#allocation2 + $0x6b0] sm:$0xff] }
  0x54   :  { %537 = vmatpush.msrb.mxu1 %v380_v42  ;;  %578 = vmatpush.msrb.mxu3 %v138_v43  ;;  %v297_v34 = vld [vmem:[#allocation2 + $0x578] sm:$0xff]  ;;  %v390_v37 = vld [vmem:[#allocation2 + $0x860] sm:$0xff]  ;;  %v243_v40 = vld [vmem:[#allocation2 + $0x3c8] sm:$0xff] }
  0x55   :  { %597 = vmatpush.msra.mxu2 %v189_v44  ;;  %519 = vmatpush.msrb.mxu0 %v326_v45  ;;  %v294_v38 = vld [vmem:[#allocation2 + $0x560] sm:$0xff]  ;;  %v387_v41 = vld [vmem:[#allocation2 + $0x848] sm:$0xff]  ;;  %v333_v43 = vld [vmem:[#allocation2 + $0x698] sm:$0xff] }
  0x56   :  { %538 = vmatpush.msrb.mxu1 %v377_v46  ;;  %579 = vmatpush.msrb.mxu3 %v135_v47  ;;  %v291_v42 = vld [vmem:[#allocation2 + $0x548] sm:$0xff]  ;;  %v240_v44 = vld [vmem:[#allocation2 + $0x3b0] sm:$0xff]  ;;  %v330_v47 = vld [vmem:[#allocation2 + $0x680] sm:$0xff] }
  0x57   :  { %444 = vmatmul.f32.vlgmr.msra.gmra.mxu0 %v1562_v48  ;;  %504 = vmatmul.f32.vlgmr.msra.gmra.mxu3 %v1567_v49  ;;  %v384_v45 = vld [vmem:[#allocation2 + $0x830] sm:$0xff] }
  0x58   :  { %598 = vmatpush.msra.mxu2 %v186_v50  ;;  %520 = vmatpush.msrb.mxu0 %v323_v51  ;;  %v288_v46 = vld [vmem:[#allocation2 + $0x530] sm:$0xff]  ;;  %v237_v50 = vld [vmem:[#allocation2 + $0x398] sm:$0xff] }
  0x59   :  { %539 = vmatpush.msrb.mxu1 %v374_v52  ;;  %580 = vmatpush.msrb.mxu3 %v132_v53  ;;  %v381_v51 = vld [vmem:[#allocation2 + $0x818] sm:$0xff]  ;;  %v327_v53 = vld [vmem:[#allocation2 + $0x668] sm:$0xff] }
  0x5a   :  { %464 = vmatmul.f32.vlgmr.msra.gmra.mxu1 %v1574_v54  ;;  %599 = vmatpush.msra.mxu2 %v183_v55  ;;  %v285_v52 = vld [vmem:[#allocation2 + $0x518] sm:$0xff]  ;;  %v234_v55 = vld [vmem:[#allocation2 + $0x380] sm:$0xff] }
  0x5b   :  { %521 = vmatpush.msrb.mxu0 %v320_v56  ;;  %540 = vmatpush.msrb.mxu1 %v371_v57  ;;  %v378_v56 = vld [vmem:[#allocation2 + $0x800] sm:$0xff] }
  0x5c   :  { %581 = vmatpush.msrb.mxu3 %v129_v58  ;;  %600 = vmatpush.msra.mxu2 %v180_v59  ;;  %v282_v57 = vld [vmem:[#allocation2 + $0x500] sm:$0xff]  ;;  %v324_v58 = vld [vmem:[#allocation2 + $0x650] sm:$0xff]  ;;  %v231_v59 = vld [vmem:[#allocation2 + $0x368] sm:$0xff] }
  0x5d   :  { %522 = vmatpush.msrb.mxu0 %v317_v60  ;;  %541 = vmatpush.msrb.mxu1 %v368_v61  ;;  %v375_v60 = vld [vmem:[#allocation2 + $0x7e8] sm:$0xff] }
  0x5e   :  { %582 = vmatpush.msrb.mxu3 %v126_v62  ;;  %1262 = vmatmul.msk.f32.vlgmr.msrb.gmra.mxu2 %vm424_vm0, %v1580_v63  ;;  %v279_v61 = vld [vmem:[#allocation2 + $0x4e8] sm:$0xff]  ;;  %v321_v62 = vld [vmem:[#allocation2 + $0x638] sm:$0xff] }
  0x5f   :  { %601 = vmatpush.msra.mxu2 %v177_v0  ;;  %523 = vmatpush.msrb.mxu0 %v314_v1  ;;  %v228_v0 = vld [vmem:[#allocation2 + $0x350] sm:$0xff] }
  0x60   :  { %542 = vmatpush.msrb.mxu1 %v365_v2  ;;  %583 = vmatpush.msrb.mxu3 %v123_v3  ;;  %v372_v1 = vld [vmem:[#allocation2 + $0x7d0] sm:$0xff]  ;;  %v318_v3 = vld [vmem:[#allocation2 + $0x620] sm:$0xff] }
  0x61   :  { %524 = vmatmul.f32.vlgmr.msrb.gmra.mxu0 %v1587_v4  ;;  %602 = vmatpush.msra.mxu2 %v174_v5  ;;  %v276_v2 = vld [vmem:[#allocation2 + $0x4d0] sm:$0xff]  ;;  %v225_v5 = vld [vmem:[#allocation2 + $0x338] sm:$0xff] }
  0x62   :  { %648 = vmatpush.msra.mxu3 %v360_v6  ;;  %543 = vmatpush.msrb.mxu1 %v362_v8  ;;  %v369_v6 = vld [vmem:[#allocation2 + $0x7b8] sm:$0xff] }
  0x63   :  { %544 = vmatmul.f32.vlgmr.msrb.gmra.mxu1 %v1592_v9  ;;  %603 = vmatpush.msra.mxu2 %v171_v10  ;;  %v273_v8 = vld [vmem:[#allocation2 + $0x4b8] sm:$0xff]  ;;  %v315_v10 = vld [vmem:[#allocation2 + $0x608] sm:$0xff] }
  0x64   :  { %649 = vmatpush.msra.mxu3 %v357_v11  ;;  %608 = vmatpush.msra.mxu0 %v264_v12  ;;  %v222_v11 = vld [vmem:[#allocation2 + $0x320] sm:$0xff] }
  0x65   :  { %668 = vmatpush.msrb.mxu2 %v408_v13  ;;  %628 = vmatpush.msra.mxu1 %v312_v14  ;;  %v366_v12 = vld [vmem:[#allocation2 + $0x7a0] sm:$0xff]  ;;  %v217_v13 = vld [vmem:[#allocation2 + $0x2f8] sm:$0xff] }
  0x66   :  { %650 = vmatpush.msra.mxu3 %v354_v15  ;;  %609 = vmatpush.msra.mxu0 %v261_v16  ;;  %v270_v14 = vld [vmem:[#allocation2 + $0x4a0] sm:$0xff]  ;;  %v219_v15 = vld [vmem:[#allocation2 + $0x308] sm:$0xff] }
  0x67   :  { %669 = vmatpush.msrb.mxu2 %v405_v17  ;;  %629 = vmatpush.msra.mxu1 %v309_v18  ;;  %v363_v16 = vld [vmem:[#allocation2 + $0x788] sm:$0xff]  ;;  %v214_v17 = vld [vmem:[#allocation2 + $0x2e0] sm:$0xff] }
  0x68   :  { %651 = vmatpush.msra.mxu3 %v351_v19  ;;  %610 = vmatpush.msra.mxu0 %v258_v20  ;;  %v267_v18 = vld [vmem:[#allocation2 + $0x488] sm:$0xff]  ;;  %v169_v19 = vld [vmem:[#allocation2 + $0x178] sm:$0xff] }
  0x69   :  { %670 = vmatpush.msrb.mxu2 %v402_v21  ;;  %630 = vmatpush.msra.mxu1 %v306_v22  ;;  %v211_v20 = vld [vmem:[#allocation2 + $0x2c8] sm:$0xff]  ;;  %v414_v21 = vld [vmem:[#allocation2 + $0x920] sm:$0xff] }
  0x6a   :  { %652 = vmatpush.msra.mxu3 %v348_v23  ;;  %611 = vmatpush.msra.mxu0 %v255_v24  ;;  %v166_v22 = vld [vmem:[#allocation2 + $0x160] sm:$0xff]  ;;  %v208_v23 = vld [vmem:[#allocation2 + $0x2b0] sm:$0xff]  ;;  %v411_v24 = vld [vmem:[#allocation2 + $0x908] sm:$0xff] }
  0x6b   :  { %671 = vmatpush.msrb.mxu2 %v399_v25  ;;  %631 = vmatpush.msra.mxu1 %v303_v26  ;;  %v313_v25 = vld [vmem:[#allocation2 + $0x5f8] sm:$0xff]  ;;  %v163_v26 = vld [vmem:[#allocation2 + $0x148] sm:$0xff] }
  0x6c   :  { %653 = vmatpush.msra.mxu3 %v345_v27  ;;  %612 = vmatpush.msra.mxu0 %v252_v28  ;;  %v205_v27 = vld [vmem:[#allocation2 + $0x298] sm:$0xff]  ;;  %v310_v28 = vld [vmem:[#allocation2 + $0x5e0] sm:$0xff] }
  0x6d   :  { %672 = vmatpush.msrb.mxu2 %v396_v29  ;;  %632 = vmatpush.msra.mxu1 %v300_v30  ;;  %v265_v29 = vld [vmem:[#allocation2 + $0x478] sm:$0xff]  ;;  %v160_v30 = vld [vmem:[#allocation2 + $0x130] sm:$0xff] }
  0x6e   :  { %654 = vmatpush.msra.mxu3 %v342_v31  ;;  %613 = vmatpush.msra.mxu0 %v249_v32  ;;  %v202_v31 = vld [vmem:[#allocation2 + $0x280] sm:$0xff]  ;;  %v307_v32 = vld [vmem:[#allocation2 + $0x5c8] sm:$0xff] }
  0x6f   :  { %673 = vmatpush.msrb.mxu2 %v393_v33  ;;  %633 = vmatpush.msra.mxu1 %v297_v34  ;;  %v157_v33 = vld [vmem:[#allocation2 + $0x118] sm:$0xff]  ;;  %v199_v34 = vld [vmem:[#allocation2 + $0x268] sm:$0xff] }
  0x70   :  { %655 = vmatpush.msra.mxu3 %v339_v35  ;;  %614 = vmatpush.msra.mxu0 %v246_v36  ;;  %v262_v35 = vld [vmem:[#allocation2 + $0x460] sm:$0xff]  ;;  %v304_v36 = vld [vmem:[#allocation2 + $0x5b0] sm:$0xff] }
  0x71   :  { %674 = vmatpush.msrb.mxu2 %v390_v37  ;;  %634 = vmatpush.msra.mxu1 %v294_v38  ;;  %v154_v37 = vld [vmem:[#allocation2 + $0x100] sm:$0xff]  ;;  %v196_v38 = vld [vmem:[#allocation2 + $0x250] sm:$0xff] }
  0x72   :  { %656 = vmatpush.msra.mxu3 %v336_v39  ;;  %615 = vmatpush.msra.mxu0 %v243_v40  ;;  %v259_v39 = vld [vmem:[#allocation2 + $0x448] sm:$0xff]  ;;  %v301_v40 = vld [vmem:[#allocation2 + $0x598] sm:$0xff] }
  0x73   :  { %675 = vmatpush.msrb.mxu2 %v387_v41  ;;  %635 = vmatpush.msra.mxu1 %v291_v42  ;;  %v151_v41 = vld [vmem:[#allocation2 + $0xe8] sm:$0xff]  ;;  %v193_v42 = vld [vmem:[#allocation2 + $0x238] sm:$0xff] }
  0x74   :  { %657 = vmatpush.msra.mxu3 %v333_v43  ;;  %616 = vmatpush.msra.mxu0 %v240_v44  ;;  %v256_v43 = vld [vmem:[#allocation2 + $0x430] sm:$0xff]  ;;  %v298_v44 = vld [vmem:[#allocation2 + $0x580] sm:$0xff] }
  0x75   :  { %676 = vmatpush.msrb.mxu2 %v384_v45  ;;  %636 = vmatpush.msra.mxu1 %v288_v46  ;;  %v148_v45 = vld [vmem:[#allocation2 + $0xd0] sm:$0xff]  ;;  %v190_v46 = vld [vmem:[#allocation2 + $0x220] sm:$0xff] }
  0x76   :  { %658 = vmatpush.msra.mxu3 %v330_v47  ;;  %617 = vmatpush.msra.mxu0 %v237_v50  ;;  %v253_v47 = vld [vmem:[#allocation2 + $0x418] sm:$0xff]  ;;  %v295_v50 = vld [vmem:[#allocation2 + $0x568] sm:$0xff] }
  0x77   :  { %677 = vmatpush.msrb.mxu2 %v381_v51  ;;  %637 = vmatpush.msra.mxu1 %v285_v52  ;;  %v145_v51 = vld [vmem:[#allocation2 + $0xb8] sm:$0xff]  ;;  %v187_v52 = vld [vmem:[#allocation2 + $0x208] sm:$0xff] }
  0x78   :  { %659 = vmatpush.msra.mxu3 %v327_v53  ;;  %618 = vmatpush.msra.mxu0 %v234_v55  ;;  %v250_v53 = vld [vmem:[#allocation2 + $0x400] sm:$0xff]  ;;  %v292_v55 = vld [vmem:[#allocation2 + $0x550] sm:$0xff] }
  0x79   :  { %678 = vmatpush.msrb.mxu2 %v378_v56  ;;  %584 = vmatmul.f32.vlgmr.msrb.gmra.mxu3 %v1562_v48  ;;  %v142_v56 = vld [vmem:[#allocation2 + $0xa0] sm:$0xff] }
  0x7a   :  { %638 = vmatpush.msra.mxu1 %v282_v57  ;;  %660 = vmatpush.msra.mxu3 %v324_v58  ;;  %v184_v57 = vld [vmem:[#allocation2 + $0x1f0] sm:$0xff]  ;;  %v247_v58 = vld [vmem:[#allocation2 + $0x3e8] sm:$0xff] }
  0x7b   :  { %619 = vmatpush.msra.mxu0 %v231_v59  ;;  %679 = vmatpush.msrb.mxu2 %v375_v60  ;;  %v289_v59 = vld [vmem:[#allocation2 + $0x538] sm:$0xff]  ;;  %v139_v60 = vld [vmem:[#allocation2 + $0x88] sm:$0xff] }
  0x7c   :  { %604 = vmatmul.f32.vlgmr.msra.gmra.mxu2 %v1574_v54  ;;  %639 = vmatpush.msra.mxu1 %v279_v61  ;;  %v181_v61 = vld [vmem:[#allocation2 + $0x1d8] sm:$0xff] }
  0x7d   :  { %661 = vmatpush.msra.mxu3 %v321_v62  ;;  %620 = vmatpush.msra.mxu0 %v228_v0  ;;  %v244_v62 = vld [vmem:[#allocation2 + $0x3d0] sm:$0xff]  ;;  %v286_v0 = vld [vmem:[#allocation2 + $0x520] sm:$0xff] }
  0x7e   :  { %680 = vmatpush.msrb.mxu2 %v372_v1  ;;  %640 = vmatpush.msra.mxu1 %v276_v2  ;;  %v136_v1 = vld [vmem:[#allocation2 + $0x70] sm:$0xff]  ;;  %v178_v2 = vld [vmem:[#allocation2 + $0x1c0] sm:$0xff] }
  0x7f   :  { %662 = vmatpush.msra.mxu3 %v318_v3  ;;  %621 = vmatpush.msra.mxu0 %v225_v5  ;;  %v241_v3 = vld [vmem:[#allocation2 + $0x3b8] sm:$0xff]  ;;  %v283_v5 = vld [vmem:[#allocation2 + $0x508] sm:$0xff] }
  0x80   :  { %681 = vmatpush.msrb.mxu2 %v369_v6  ;;  %641 = vmatpush.msra.mxu1 %v273_v8  ;;  %v133_v6 = vld [vmem:[#allocation2 + $0x58] sm:$0xff]  ;;  %v175_v8 = vld [vmem:[#allocation2 + $0x1a8] sm:$0xff] }
  0x81   :  { %663 = vmatpush.msra.mxu3 %v315_v10  ;;  %622 = vmatpush.msra.mxu0 %v222_v11  ;;  %v238_v10 = vld [vmem:[#allocation2 + $0x3a0] sm:$0xff]  ;;  %v280_v11 = vld [vmem:[#allocation2 + $0x4f0] sm:$0xff] }
  0x82   :  { %682 = vmatpush.msrb.mxu2 %v366_v12  ;;  %642 = vmatpush.msra.mxu1 %v270_v14  ;;  %v130_v12 = vld [vmem:[#allocation2 + $0x40] sm:$0xff]  ;;  %v409_v14 = vld [vmem:[#allocation2 + $0x8f8] sm:$0xff] }
  0x83   :  { %728 = vmatpush.msrb.mxu3 %v217_v13  ;;  %623 = vmatpush.msra.mxu0 %v219_v15  ;;  %v172_v13 = vld [vmem:[#allocation2 + $0x190] sm:$0xff]  ;;  %v235_v15 = vld [vmem:[#allocation2 + $0x388] sm:$0xff] }
  0x84   :  { %664 = vmatmul.f32.vlgmr.msra.gmra.mxu3 %v1587_v4  ;;  %683 = vmatpush.msrb.mxu2 %v363_v16  ;;  %v127_v16 = vld [vmem:[#allocation2 + $0x28] sm:$0xff] }
  0x85   :  { %729 = vmatpush.msrb.mxu3 %v214_v17  ;;  %624 = vmatmul.f32.vlgmr.msra.gmra.mxu0 %v1556_v7  ;;  %v277_v17 = vld [vmem:[#allocation2 + $0x4d8] sm:$0xff] }
  0x86   :  { %643 = vmatpush.msra.mxu1 %v267_v18  ;;  %684 = vmatmul.f32.vlgmr.msrb.gmra.mxu2 %v1592_v9  ;;  %v406_v18 = vld [vmem:[#allocation2 + $0x8e0] sm:$0xff] }
  0x87   :  { %730 = vmatpush.msrb.mxu3 %v211_v20  ;;  %644 = vmatmul.f32.vlgmr.msra.gmra.mxu1 %v1567_v49  ;;  %v124_v20 = vld [vmem:[#allocation2 + $0x10] sm:$0xff] }
  0x88   :  { %708 = vmatpush.msrb.mxu1 %v169_v19  ;;  %702 = vmatpush.msrb.mxu0 %v414_v21  ;;  %v232_v19 = vld [vmem:[#allocation2 + $0x370] sm:$0xff]  ;;  %v274_v21 = vld [vmem:[#allocation2 + $0x4c0] sm:$0xff] }
  0x89   :  { %731 = vmatpush.msrb.mxu3 %v208_v23  ;;  %768 = vmatpush.msra.mxu2 %v313_v25  ;;  %v403_v23 = vld [vmem:[#allocation2 + $0x8c8] sm:$0xff]  ;;  %v358_v25 = vld [vmem:[#allocation2 + $0x760] sm:$0xff] }
  0x8a   :  { %709 = vmatpush.msrb.mxu1 %v166_v22  ;;  %703 = vmatpush.msrb.mxu0 %v411_v24  ;;  %v361_v22 = vld [vmem:[#allocation2 + $0x778] sm:$0xff] }
  0x8b   :  { %732 = vmatpush.msrb.mxu3 %v205_v27  ;;  %769 = vmatpush.msra.mxu2 %v310_v28  ;;  %v229_v24 = vld [vmem:[#allocation2 + $0x358] sm:$0xff]  ;;  %v271_v27 = vld [vmem:[#allocation2 + $0x4a8] sm:$0xff]  ;;  %v226_v28 = vld [vmem:[#allocation2 + $0x340] sm:$0xff] }
  0x8c   :  { %710 = vmatpush.msrb.mxu1 %v163_v26  ;;  %748 = vmatpush.msra.mxu0 %v265_v29  ;;  %v400_v26 = vld [vmem:[#allocation2 + $0x8b0] sm:$0xff]  ;;  %v355_v29 = vld [vmem:[#allocation2 + $0x748] sm:$0xff] }
  0x8d   :  { %733 = vmatpush.msrb.mxu3 %v202_v31  ;;  %1263 = vmatmul.msk.f32.vlgmr.msrb.gmra.mxu0 %vm424_vm0, %v1580_v63  ;;  %v268_v31 = vld [vmem:[#allocation2 + $0x490] sm:$0xff] }
  0x8e   :  { %711 = vmatpush.msrb.mxu1 %v160_v30  ;;  %770 = vmatpush.msra.mxu2 %v307_v32  ;;  %v397_v30 = vld [vmem:[#allocation2 + $0x898] sm:$0xff]  ;;  %v352_v32 = vld [vmem:[#allocation2 + $0x730] sm:$0xff] }
  0x8f   :  { %734 = vmatpush.msrb.mxu3 %v199_v34  ;;  %749 = vmatpush.msra.mxu0 %v262_v35  ;;  %v223_v34 = vld [vmem:[#allocation2 + $0x328] sm:$0xff]  ;;  %v349_v35 = vld [vmem:[#allocation2 + $0x718] sm:$0xff] }
  0x90   :  { %712 = vmatpush.msrb.mxu1 %v157_v33  ;;  %771 = vmatpush.msra.mxu2 %v304_v36  ;;  %v394_v33 = vld [vmem:[#allocation2 + $0x880] sm:$0xff]  ;;  %v391_v36 = vld [vmem:[#allocation2 + $0x868] sm:$0xff] }
  0x91   :  { %735 = vmatpush.msrb.mxu3 %v196_v38  ;;  %750 = vmatpush.msra.mxu0 %v259_v39  ;;  %v388_v38 = vld [vmem:[#allocation2 + $0x850] sm:$0xff]  ;;  %v343_v39 = vld [vmem:[#allocation2 + $0x6e8] sm:$0xff] }
  0x92   :  { %713 = vmatpush.msrb.mxu1 %v154_v37  ;;  %772 = vmatpush.msra.mxu2 %v301_v40  ;;  %v220_v37 = vld [vmem:[#allocation2 + $0x310] sm:$0xff]  ;;  %v385_v40 = vld [vmem:[#allocation2 + $0x838] sm:$0xff] }
  0x93   :  { %736 = vmatpush.msrb.mxu3 %v193_v42  ;;  %751 = vmatpush.msra.mxu0 %v256_v43  ;;  %v340_v42 = vld [vmem:[#allocation2 + $0x6d0] sm:$0xff]  ;;  %v382_v43 = vld [vmem:[#allocation2 + $0x820] sm:$0xff] }
  0x94   :  { %714 = vmatpush.msrb.mxu1 %v151_v41  ;;  %773 = vmatpush.msra.mxu2 %v298_v44  ;;  %v415_v41 = vld [vmem:[#allocation2 + $0x928] sm:$0xff]  ;;  %v337_v44 = vld [vmem:[#allocation2 + $0x6b8] sm:$0xff] }
  0x95   :  { %737 = vmatpush.msrb.mxu3 %v190_v46  ;;  %752 = vmatpush.msra.mxu0 %v253_v47  ;;  %v376_v46 = vld [vmem:[#allocation2 + $0x7f0] sm:$0xff]  ;;  %v331_v47 = vld [vmem:[#allocation2 + $0x688] sm:$0xff] }
  0x96   :  { %715 = vmatpush.msrb.mxu1 %v148_v45  ;;  %774 = vmatpush.msra.mxu2 %v295_v50  ;;  %v379_v45 = vld [vmem:[#allocation2 + $0x808] sm:$0xff]  ;;  %v373_v50 = vld [vmem:[#allocation2 + $0x7d8] sm:$0xff] }
  0x97   :  { %738 = vmatpush.msrb.mxu3 %v187_v52  ;;  %753 = vmatpush.msra.mxu0 %v250_v53  ;;  %v370_v52 = vld [vmem:[#allocation2 + $0x7c0] sm:$0xff]  ;;  %v367_v53 = vld [vmem:[#allocation2 + $0x7a8] sm:$0xff] }
  0x98   :  { %716 = vmatpush.msrb.mxu1 %v145_v51  ;;  %775 = vmatpush.msra.mxu2 %v292_v55  ;;  %v328_v51 = vld [vmem:[#allocation2 + $0x670] sm:$0xff]  ;;  %v322_v55 = vld [vmem:[#allocation2 + $0x640] sm:$0xff] }
  0x99   :  { %739 = vmatpush.msrb.mxu3 %v184_v57  ;;  %754 = vmatpush.msra.mxu0 %v247_v58  ;;  %v319_v57 = vld [vmem:[#allocation2 + $0x628] sm:$0xff]  ;;  %v316_v58 = vld [vmem:[#allocation2 + $0x610] sm:$0xff] }
  0x9a   :  { %717 = vmatpush.msrb.mxu1 %v142_v56  ;;  %776 = vmatpush.msra.mxu2 %v289_v59  ;;  %v364_v56 = vld [vmem:[#allocation2 + $0x790] sm:$0xff]  ;;  %v935_v59 = vld [vmem:[#allocation7 + $0xf0] sm:$0xff] }
  0x9b   :  { %740 = vmatpush.msrb.mxu3 %v181_v61  ;;  %755 = vmatpush.msra.mxu0 %v244_v62  ;;  %v934_v61 = vld [vmem:[#allocation7 + $0xe8] sm:$0xff]  ;;  %v931_v62 = vld [vmem:[#allocation7 + $0xd0] sm:$0xff] }
  0x9c   :  { %718 = vmatpush.msrb.mxu1 %v139_v60  ;;  %777 = vmatpush.msra.mxu2 %v286_v0  ;;  %v933_v60 = vld [vmem:[#allocation7 + $0xe0] sm:$0xff]  ;;  %v932_v0 = vld [vmem:[#allocation7 + $0xd8] sm:$0xff] }
  0x9d   :  { %741 = vmatpush.msrb.mxu3 %v178_v2  ;;  %756 = vmatpush.msra.mxu0 %v241_v3  ;;  %v930_v2 = vld [vmem:[#allocation7 + $0xc8] sm:$0xff]  ;;  %v928_v3 = vld [vmem:[#allocation7 + $0xb8] sm:$0xff] }
  0x9e   :  { %719 = vmatpush.msrb.mxu1 %v136_v1  ;;  %778 = vmatpush.msra.mxu2 %v283_v5  ;;  %v929_v1 = vld [vmem:[#allocation7 + $0xc0] sm:$0xff]  ;;  %v1612_v5 = vld [vmem:[#allocation5] sm:$0x7] }
  0x9f   :  { %742 = vmatpush.msrb.mxu3 %v175_v8  ;;  %757 = vmatpush.msra.mxu0 %v238_v10  ;;  %v923_v8 = vld [vmem:[#allocation7 + $0x90] sm:$0xff]  ;;  %v924_v10 = vld [vmem:[#allocation7 + $0x98] sm:$0xff] }
  0xa0   :  { %720 = vmatpush.msrb.mxu1 %v133_v6  ;;  %779 = vmatpush.msra.mxu2 %v280_v11  ;;  %v926_v6 = vld [vmem:[#allocation7 + $0xa8] sm:$0xff]  ;;  %v921_v11 = vld [vmem:[#allocation7 + $0x80] sm:$0xff] }
  0xa1   :  { %743 = vmatpush.msrb.mxu3 %v172_v13  ;;  %758 = vmatpush.msra.mxu0 %v235_v15  ;;  %v922_v13 = vld [vmem:[#allocation7 + $0x88] sm:$0xff]  ;;  %v920_v15 = vld [vmem:[#allocation7 + $0x78] sm:$0xff] }
  0xa2   :  { %721 = vmatpush.msrb.mxu1 %v130_v12  ;;  %780 = vmatpush.msra.mxu2 %v277_v17  ;;  %v418_v12 = vperm.slane %v1612_v5, 0  ;;  %v917_v17 = vld [vmem:[#allocation7 + $0x60] sm:$0xff] }
  0xa3   :  { %808 = vmatpush.msra.mxu3 %v409_v14  ;;  %759 = vmatpush.msra.mxu0 %v232_v19  ;;  %v919_v14 = vld [vmem:[#allocation7 + $0x70] sm:$0xff]  ;;  %v918_v19 = vld [vmem:[#allocation7 + $0x68] sm:$0xff] }
  0xa4   :  { %722 = vmatpush.msrb.mxu1 %v127_v16  ;;  %781 = vmatpush.msra.mxu2 %v274_v21 }
  0xa5   :  { %809 = vmatpush.msra.mxu3 %v406_v18  ;;  %760 = vmatpush.msra.mxu0 %v229_v24 }
  0xa6   :  { %723 = vmatpush.msrb.mxu1 %v124_v20  ;;  %744 = vmatmul.f32.vlgmr.msrb.gmra.mxu3 %v1574_v54  ;;  %v346_v54 = vld [vmem:[#allocation2 + $0x700] sm:$0xff] }
  0xa7   :  { %810 = vmatpush.msra.mxu3 %v403_v23  ;;  %782 = vmatpush.msra.mxu2 %v271_v27  ;;  %v915_v20 = vld [vmem:[#allocation7 + $0x50] sm:$0xff]  ;;  %v916_v23 = vld [vmem:[#allocation7 + $0x58] sm:$0xff] }
  0xa8   :  { %788 = vmatpush.msra.mxu1 %v361_v22  ;;  %761 = vmatpush.msra.mxu0 %v226_v28 }
  0xa9   :  { %811 = vmatpush.msra.mxu3 %v400_v26  ;;  %783 = vmatpush.msra.mxu2 %v268_v31  ;;  %v914_v26 = vld [vmem:[#allocation7 + $0x48] sm:$0xff] }
  0xaa   :  { %789 = vmatpush.msra.mxu1 %v358_v25  ;;  %784 = vmatmul.f32.vlgmr.msra.gmra.mxu2 %v1567_v49  ;;  %v334_v49 = vld [vmem:[#allocation2 + $0x6a0] sm:$0xff]  ;;  %v913_v25 = vld [vmem:[#allocation7 + $0x40] sm:$0xff] }
  0xab   :  { %812 = vmatpush.msra.mxu3 %v397_v30  ;;  %724 = vmatmul.f32.vlgmr.msrb.gmra.mxu1 %v1562_v48  ;;  %v412_v48 = vld [vmem:[#allocation2 + $0x910] sm:$0xff] }
  0xac   :  { %790 = vmatpush.msra.mxu1 %v355_v29  ;;  %762 = vmatpush.msra.mxu0 %v223_v34  ;;  %v911_v29 = vld [vmem:[#allocation7 + $0x30] sm:$0xff]  ;;  %v912_v30 = vld [vmem:[#allocation7 + $0x38] sm:$0xff] }
  0xad   :  { %813 = vmatpush.msra.mxu3 %v394_v33  ;;  %1007 = vmatpush.msrb.mxu2 %v935_v59  ;;  %v910_v33 = vld [vmem:[#allocation7 + $0x28] sm:$0xff]  ;;  %v955_v59 = vld [vmem:[#allocation7 + $0x190] sm:$0xff] }
  0xae   :  { %791 = vmatpush.msra.mxu1 %v352_v32  ;;  %763 = vmatpush.msra.mxu0 %v220_v37  ;;  %v909_v32 = vld [vmem:[#allocation7 + $0x20] sm:$0xff]  ;;  %v907_v37 = vld [vmem:[#allocation7 + $0x10] sm:$0xff] }
  0xaf   :  { %814 = vmatpush.msra.mxu3 %v391_v36  ;;  %764 = vmatmul.f32.vlgmr.msra.gmra.mxu0 %v1556_v7  ;;  %v325_v7 = vld [vmem:[#allocation2 + $0x658] sm:$0xff] }
  0xb0   :  { %792 = vmatpush.msra.mxu1 %v349_v35  ;;  %842 = vmatpush.msrb.mxu0 %v415_v41  ;;  %v906_v41 = vld [vmem:[#allocation7 + $0x8] sm:$0xff] }
  0xb1   :  { %815 = vmatpush.msra.mxu3 %v388_v38  ;;  %1008 = vmatpush.msrb.mxu2 %v933_v60 }
  0xb2   :  { %793 = vmatpush.msra.mxu1 %v346_v54  ;;  %843 = vmatpush.msrb.mxu0 %v412_v48  ;;  %v908_v54 = vld [vmem:[#allocation7 + $0x18] sm:$0xff]  ;;  %v967_v48 = vld [vmem:[#allocation7 + $0x1f0] sm:$0xff] }
  0xb3   :  { %816 = vmatpush.msra.mxu3 %v385_v40  ;;  %1009 = vmatpush.msrb.mxu2 %v931_v62  ;;  %v905_v40 = vld [vmem:[#allocation7] sm:$0xff]  ;;  %v954_v62 = vld [vmem:[#allocation7 + $0x188] sm:$0xff] }
  0xb4   :  { %794 = vmatpush.msra.mxu1 %v343_v39  ;;  %1027 = vmatpush.msra.mxu0 %v967_v48 }
  0xb5   :  { %817 = vmatpush.msra.mxu3 %v382_v43  ;;  %1010 = vmatpush.msrb.mxu2 %v929_v1 }
  0xb6   :  { %795 = vmatpush.msra.mxu1 %v340_v42 }
  0xb7   :  { %818 = vmatpush.msra.mxu3 %v379_v45  ;;  %1264 = vmatmul.msk.f32.vlgmr.msrb.gmra.mxu0 %vm424_vm0, %v1580_v63  ;;  %v936_v63 = vld [vmem:[#allocation7 + $0xf8] sm:$0xff]  ;;  %v965_v45 = vld [vmem:[#allocation7 + $0x1e0] sm:$0xff] }
  0xb8   :  { %796 = vmatpush.msra.mxu1 %v337_v44  ;;  %v968_v44 = vld [vmem:[#allocation7 + $0x1f8] sm:$0xff]  ;;  %1028 = vmatpush.msra.mxu0 %v965_v45 }
  0xb9   :  { %819 = vmatpush.msra.mxu3 %v376_v46 }
  0xba   :  { %797 = vmatpush.msra.mxu1 %v334_v49  ;;  %v966_v49 = vld [vmem:[#allocation7 + $0x1e8] sm:$0xff] }
  0xbb   :  { %820 = vmatpush.msra.mxu3 %v373_v50  ;;  %v963_v50 = vld [vmem:[#allocation7 + $0x1d0] sm:$0xff] }
  0xbc   :  { %798 = vmatpush.msra.mxu1 %v331_v47  ;;  %1029 = vmatpush.msra.mxu0 %v963_v50  ;;  %v1000_v50 = vld [vmem:[#allocation7 + $0x2f8] sm:$0xff] }
  0xbd   :  { %821 = vmatpush.msra.mxu3 %v370_v52  ;;  %v961_v52 = vld [vmem:[#allocation7 + $0x1c0] sm:$0xff] }
  0xbe   :  { %799 = vmatpush.msra.mxu1 %v328_v51  ;;  %v964_v51 = vld [vmem:[#allocation7 + $0x1d8] sm:$0xff]  ;;  %1030 = vmatpush.msra.mxu0 %v961_v52 }
  0xbf   :  { %822 = vmatpush.msra.mxu3 %v367_v53  ;;  %v959_v53 = vld [vmem:[#allocation7 + $0x1b0] sm:$0xff] }
  0xc0   :  { %800 = vmatpush.msra.mxu1 %v325_v7  ;;  %v962_v7 = vld [vmem:[#allocation7 + $0x1c8] sm:$0xff]  ;;  %1031 = vmatpush.msra.mxu0 %v959_v53 }
  0xc1   :  { %823 = vmatpush.msra.mxu3 %v364_v56  ;;  %v957_v56 = vld [vmem:[#allocation7 + $0x1a0] sm:$0xff]  ;;  %v998_v53 = vld [vmem:[#allocation7 + $0x2e8] sm:$0xff] }
  0xc2   :  { %801 = vmatpush.msra.mxu1 %v322_v55  ;;  %824 = vmatmul.f32.vlgmr.msra.gmra.mxu3 %v1592_v9  ;;  %v927_v9 = vld [vmem:[#allocation7 + $0xb0] sm:$0xff]  ;;  %v960_v55 = vld [vmem:[#allocation7 + $0x1b8] sm:$0xff] }
  0xc3   :  { %1067 = vmatpush.msrb.mxu3 %v936_v63  ;;  %1011 = vmatpush.msrb.mxu2 %v927_v9  ;;  %v956_v63 = vld [vmem:[#allocation7 + $0x198] sm:$0xff] }
  0xc4   :  { %802 = vmatpush.msra.mxu1 %v319_v57  ;;  %v958_v57 = vld [vmem:[#allocation7 + $0x1a8] sm:$0xff]  ;;  %1032 = vmatpush.msra.mxu0 %v957_v56  ;;  %v952_v9 = vld [vmem:[#allocation7 + $0x178] sm:$0xff] }
  0xc5   :  { %1068 = vmatpush.msrb.mxu3 %v934_v61  ;;  %v485_v22 = vpop.f32.mrf.mxu2  ;;  %v953_v61 = vld [vmem:[#allocation7 + $0x180] sm:$0xff] }
  0xc6   :  { %803 = vmatpush.msra.mxu1 %v316_v58  ;;  %1033 = vmatpush.msra.mxu0 %v955_v59  ;;  %v993_v59 = vld [vmem:[#allocation7 + $0x2c0] sm:$0xff] }
  0xc7   :  { %804 = vmatmul.f32.vlgmr.msra.gmra.mxu1 %v1587_v4  ;;  %1069 = vmatpush.msrb.mxu3 %v932_v0  ;;  %v925_v4 = vld [vmem:[#allocation7 + $0xa0] sm:$0xff]  ;;  %v419_v0 = vperm.slane %v1612_v5, 1 }
  0xc8   :  { %1012 = vmatpush.msrb.mxu2 %v925_v4  ;;  %1034 = vmatpush.msra.mxu0 %v953_v61  ;;  %v949_v4 = vld [vmem:[#allocation7 + $0x160] sm:$0xff]  ;;  %v992_v61 = vld [vmem:[#allocation7 + $0x2b8] sm:$0xff] }
  0xc9   :  { %1070 = vmatpush.msrb.mxu3 %v930_v2  ;;  %v951_v2 = vld [vmem:[#allocation7 + $0x170] sm:$0xff] }
  0xca   :  { %1013 = vmatpush.msrb.mxu2 %v923_v8  ;;  %1035 = vmatpush.msra.mxu0 %v951_v2 }
  0xcb   :  { %1071 = vmatpush.msrb.mxu3 %v928_v3 }
  0xcc   :  { %1014 = vmatpush.msrb.mxu2 %v921_v11  ;;  %1036 = vmatpush.msra.mxu0 %v949_v4 }
  0xcd   :  { %1072 = vmatpush.msrb.mxu3 %v926_v6  ;;  %v950_v6 = vld [vmem:[#allocation7 + $0x168] sm:$0xff] }
  0xce   :  { %1015 = vmatpush.msrb.mxu2 %v919_v14 }
  0xcf   :  { %1073 = vmatpush.msrb.mxu3 %v924_v10 }
  0xd0   :  { %1016 = vmatpush.msrb.mxu2 %v917_v17 }
  0xd1   :  { %1074 = vmatpush.msrb.mxu3 %v922_v13  ;;  %v948_v13 = vld [vmem:[#allocation7 + $0x158] sm:$0xff] }
  0xd2   :  { %1017 = vmatpush.msrb.mxu2 %v915_v20  ;;  %v946_v20 = vld [vmem:[#allocation7 + $0x148] sm:$0xff] }
  0xd3   :  { %1075 = vmatpush.msrb.mxu3 %v920_v15 }
  0xd4   :  { %v445_v16 = vpop.f32.mrf.mxu0  ;;  %1018 = vmatpush.msrb.mxu2 %v913_v25 }
  0xd5   :  { %v446_v18 = vadd.f32 %v445_v16, %v418_v12  ;;  %1076 = vmatpush.msrb.mxu3 %v918_v19  ;;  %v947_v12 = vld [vmem:[#allocation7 + $0x150] sm:$0xff]  ;;  %v945_v19 = vld [vmem:[#allocation7 + $0x140] sm:$0xff] }
  0xd6   :  { %1019 = vmatpush.msrb.mxu2 %v911_v29  ;;  %1037 = vmatpush.msra.mxu0 %v947_v12  ;;  %v984_v12 = vld [vmem:[#allocation7 + $0x278] sm:$0xff] }
  0xd7   :  { %v465_v21 = vpop.f32.mrf.mxu1  ;;  %1077 = vmatpush.msrb.mxu3 %v916_v23  ;;  %v943_v23 = vld [vmem:[#allocation7 + $0x130] sm:$0xff] }
  0xd8   :  { %v466_v24 = vadd.f32 %v465_v21, %v446_v18  ;;  %1020 = vmatpush.msrb.mxu2 %v909_v32  ;;  %1038 = vmatpush.msra.mxu0 %v945_v19  ;;  %v978_v19 = vld [vmem:[#allocation7 + $0x248] sm:$0xff] }
  0xd9   :  { %1078 = vmatpush.msrb.mxu3 %v914_v26 }
  0xda   :  { %v486_v27 = vadd.f32 %v485_v22, %v466_v24  ;;  %v505_v28 = vpop.f32.mrf.mxu3  ;;  %1021 = vmatpush.msrb.mxu2 %v907_v37  ;;  %v944_v24 = vld [vmem:[#allocation7 + $0x138] sm:$0xff]  ;;  %1039 = vmatpush.msra.mxu0 %v943_v23 }
  0xdb   :  { %1079 = vmatpush.msrb.mxu3 %v912_v30  ;;  %v939_v30 = vld [vmem:[#allocation7 + $0x110] sm:$0xff]  ;;  %v976_v23 = vld [vmem:[#allocation7 + $0x238] sm:$0xff] }
  0xdc   :  { %v506_v31 = vadd.f32 %v505_v28, %v486_v27  ;;  %1022 = vmatpush.msrb.mxu2 %v905_v40  ;;  %v941_v27 = vld [vmem:[#allocation7 + $0x120] sm:$0xff]  ;;  %v942_v28 = vld [vmem:[#allocation7 + $0x128] sm:$0xff] }
  0xdd   :  { %1080 = vmatpush.msrb.mxu3 %v910_v33  ;;  %1040 = vmatpush.msra.mxu0 %v941_v27  ;;  %v971_v27 = vld [vmem:[#allocation7 + $0x210] sm:$0xff] }
  0xde   :  { %v525_v34 = vpop.f32.mrf.mxu0  ;;  %1087 = vmatpush.msra.mxu2 %v968_v44 }
  0xdf   :  { %v526_v35 = vadd.f32 %v525_v34, %v506_v31  ;;  %1081 = vmatpush.msrb.mxu3 %v908_v54  ;;  %v940_v31 = vld [vmem:[#allocation7 + $0x118] sm:$0xff]  ;;  %v937_v34 = vld [vmem:[#allocation7 + $0x100] sm:$0xff]  ;;  %1041 = vmatpush.msra.mxu0 %v939_v30 }
  0xe0   :  { %v545_v36 = vpop.f32.mrf.mxu1  ;;  %1088 = vmatpush.msra.mxu2 %v966_v49  ;;  %v969_v30 = vld [vmem:[#allocation7 + $0x200] sm:$0xff] }
  0xe1   :  { %v546_v38 = vadd.f32 %v545_v36, %v526_v35  ;;  %v565_v39 = vpop.f32.mrf.mxu2  ;;  %1082 = vmatpush.msrb.mxu3 %v906_v41  ;;  %v938_v35 = vld [vmem:[#allocation7 + $0x108] sm:$0xff]  ;;  %1042 = vmatpush.msra.mxu0 %v937_v34 }
  0xe2   :  { %1089 = vmatpush.msra.mxu2 %v964_v51 }
  0xe3   :  { %v566_v42 = vadd.f32 %v565_v39, %v546_v38  ;;  %1107 = vmatpush.msrb.mxu0 %v1000_v50  ;;  %v1196_v50 = vld [vmem:[#allocation10 + $0xf8] sm:$0xff] }
  0xe4   :  { %1090 = vmatpush.msra.mxu2 %v962_v7  ;;  %v997_v7 = vld [vmem:[#allocation7 + $0x2e0] sm:$0xff]  ;;  %1221 = vmatpush.msra.mxu3 %v1196_v50 }
  0xe5   :  { %v1265_v43 = vmul.f32 -1.442695, %v566_v42  ;;  %1108 = vmatpush.msrb.mxu0 %v998_v53  ;;  %v1194_v53 = vld [vmem:[#allocation10 + $0xe8] sm:$0xff] }
  0xe6   :  { %1091 = vmatpush.msra.mxu2 %v960_v55 }
  0xe7   :  { %1284 = vpow2.f32 %v1265_v43 }
  0xe8   :  { %1092 = vmatpush.msra.mxu2 %v958_v57  ;;  %v995_v57 = vld [vmem:[#allocation7 + $0x2d0] sm:$0xff] }
  0xea   :  { %1093 = vmatpush.msra.mxu2 %v956_v63  ;;  %v994_v63 = vld [vmem:[#allocation7 + $0x2c8] sm:$0xff] }
  0xec   :  { %1094 = vmatpush.msra.mxu2 %v954_v62  ;;  %v420_v62 = vperm.slane %v1612_v5, 2  ;;  %v981_v5 = vld [vmem:[#allocation7 + $0x260] sm:$0xff] }
  0xed   :  { %v1285_v46 = vpop.eup %1284 }
  0xee   :  { %v857_v47 = vadd.f32 1.0, %v1285_v46  ;;  %1095 = vmatpush.msra.mxu2 %v952_v9  ;;  %v987_v9 = vld [vmem:[#allocation7 + $0x290] sm:$0xff] }
  0xf0   :  { %1286 = vrcp.f32 %v857_v47  ;;  %v871_v3 = vand.u32 2147483648, %v857_v47  ;;  %vm865_vm1 = vweird.f32 %v857_v47  ;;  %v869_v10 = vand.u32 2147483647, %v857_v47  ;;  %1096 = vmatpush.msra.mxu2 %v950_v6  ;;  %v985_v6 = vld [vmem:[#allocation7 + $0x280] sm:$0xff] }
  0xf2   :  { %v872_v16 = vor.u32 1.1754944e-38, %v871_v3  ;;  %vm870_vm4 = vcmp.eq.f32.partialorder %v869_v10, 8.507059e+37  ;;  %1097 = vmatpush.msra.mxu2 %v948_v13  ;;  %v988_v3 = vld [vmem:[#allocation7 + $0x298] sm:$0xff]  ;;  %v982_v13 = vld [vmem:[#allocation7 + $0x268] sm:$0xff] }
  0xf4   :  { %1098 = vmatpush.msra.mxu2 %v946_v20 }
  0xf6   :  { %v1287_v58 = vpop.eup %1286  ;;  %1099 = vmatpush.msra.mxu2 %v944_v24  ;;  %v973_v24 = vld [vmem:[#allocation7 + $0x220] sm:$0xff] }
  0xf7   :  { %v861_v60 = vmul.f32 %v1287_v58, %v857_v47  ;;  %vm866_vm2 = vweird.f32 %v1287_v58  ;;  %v999_v47 = vld [vmem:[#allocation7 + $0x2f0] sm:$0xff] }
  0xf8   :  { %vm867_vm3 = vmor %vm865_vm1, %vm866_vm2  ;;  %1100 = vmatpush.msra.mxu2 %v942_v28  ;;  %1047 = vmatpush.msrb.mxu1 %v999_v47  ;;  %v972_v28 = vld [vmem:[#allocation7 + $0x218] sm:$0xff] }
  0xf9   :  { %v862_v1 = vsub.f32 1.0, %v861_v60  ;;  %v991_v60 = vld [vmem:[#allocation7 + $0x2b0] sm:$0xff]  ;;  %v1180_v47 = vld [vmem:[#allocation10 + $0x78] sm:$0xff] }
  0xfa   :  { %1101 = vmatpush.msra.mxu2 %v940_v31  ;;  %1048 = vmatpush.msrb.mxu1 %v997_v7  ;;  %v970_v31 = vld [vmem:[#allocation7 + $0x208] sm:$0xff] }
  0xfb   :  { %v863_v8 = vmul.f32 %v1287_v58, %v862_v1  ;;  %v990_v1 = vld [vmem:[#allocation7 + $0x2a8] sm:$0xff] }
  0xfc   :  { %v585_v11 = vpop.f32.mrf.mxu3  ;;  %1102 = vmatpush.msra.mxu2 %v938_v35  ;;  %1049 = vmatpush.msrb.mxu1 %v995_v57  ;;  %v1178_v7 = vld [vmem:[#allocation10 + $0x68] sm:$0xff]  ;;  %v1176_v57 = vld [vmem:[#allocation10 + $0x58] sm:$0xff] }
  0xfd   :  { %v586_v14 = vadd.f32 %v585_v11, %v419_v0  ;;  %v864_v15 = vadd.f32 %v1287_v58, %v863_v8  ;;  %v989_v0 = vld [vmem:[#allocation7 + $0x2a0] sm:$0xff]  ;;  %v986_v8 = vld [vmem:[#allocation7 + $0x288] sm:$0xff]  ;;  %v983_v11 = vld [vmem:[#allocation7 + $0x270] sm:$0xff] }
  0xfe   :  { %1050 = vmatpush.msrb.mxu1 %v993_v59  ;;  %v1175_v59 = vld [vmem:[#allocation10 + $0x50] sm:$0xff] }
  0xff   :  { %v605_v17 = vpop.f32.mrf.mxu2  ;;  %v868_v18 = vsel %vm867_vm3, %v1287_v58, %v864_v15  ;;  %v996_v58 = vld [vmem:[#allocation7 + $0x2d8] sm:$0xff] }
 0x100   :  { %v606_v21 = vadd.f32 %v605_v17, %v586_v14  ;;  %v873_v22 = vsel %vm870_vm4, %v872_v16, %v868_v18  ;;  %1109 = vmatpush.msrb.mxu0 %v996_v58  ;;  %1051 = vmatpush.msrb.mxu1 %v991_v60  ;;  %v979_v16 = vld [vmem:[#allocation7 + $0x250] sm:$0xff]  ;;  %v980_v17 = vld [vmem:[#allocation7 + $0x258] sm:$0xff]  ;;  %v977_v18 = vld [vmem:[#allocation7 + $0x240] sm:$0xff] }
 0x101   :  { %1023 = vmatmul.f32.vlgmr.msrb.gmra.mxu2 %v873_v22  ;;  %1083 = vmatmul.f32.vlgmr.msrb.gmra.mxu3 %v873_v22  ;;  %v975_v22 = vld [vmem:[#allocation7 + $0x230] sm:$0xff]  ;;  %v1192_v58 = vld [vmem:[#allocation10 + $0xd8] sm:$0xff] }
 0x102   :  { %v625_v25 = vpop.f32.mrf.mxu0  ;;  %1110 = vmatpush.msrb.mxu0 %v994_v63  ;;  %1052 = vmatpush.msrb.mxu1 %v989_v0  ;;  %v1191_v63 = vld [vmem:[#allocation10 + $0xd0] sm:$0xff]  ;;  %v1174_v60 = vld [vmem:[#allocation10 + $0x48] sm:$0xff]  ;;  %v1189_v0 = vld [vmem:[#allocation10 + $0xc0] sm:$0xff] }
 0x103   :  { %v626_v26 = vadd.f32 %v625_v25, %v606_v21  ;;  %v974_v25 = vld [vmem:[#allocation7 + $0x228] sm:$0xff] }
 0x104   :  { %v645_v29 = vpop.f32.mrf.mxu1  ;;  %1111 = vmatpush.msrb.mxu0 %v992_v61  ;;  %1053 = vmatpush.msrb.mxu1 %v987_v9  ;;  %v1190_v61 = vld [vmem:[#allocation10 + $0xc8] sm:$0xff]  ;;  %v1171_v9 = vld [vmem:[#allocation10 + $0x30] sm:$0xff] }
 0x105   :  { %v646_v32 = vadd.f32 %v645_v29, %v626_v26 }
 0x106   :  { %1112 = vmatpush.msrb.mxu0 %v990_v1  ;;  %1054 = vmatpush.msrb.mxu1 %v985_v6  ;;  %v1172_v1 = vld [vmem:[#allocation10 + $0x38] sm:$0xff]  ;;  %v1186_v6 = vld [vmem:[#allocation10 + $0xa8] sm:$0xff] }
 0x107   :  { %v665_v33 = vpop.f32.mrf.mxu3 }
 0x108   :  { %v666_v36 = vadd.f32 %v665_v33, %v646_v32  ;;  %1113 = vmatpush.msrb.mxu0 %v988_v3  ;;  %1055 = vmatpush.msrb.mxu1 %v983_v11  ;;  %v1187_v3 = vld [vmem:[#allocation10 + $0xb0] sm:$0xff]  ;;  %v1185_v11 = vld [vmem:[#allocation10 + $0xa0] sm:$0xff] }
 0x109   :  { %v685_v37 = vpop.f32.mrf.mxu2 }
 0x10a   :  { %v686_v54 = vadd.f32 %v685_v37, %v666_v36  ;;  %v705_v38 = vpop.f32.mrf.mxu0  ;;  %1114 = vmatpush.msrb.mxu0 %v986_v8  ;;  %1056 = vmatpush.msrb.mxu1 %v981_v5  ;;  %v1168_v5 = vld [vmem:[#allocation10 + $0x18] sm:$0xff] }
 0x10c   :  { %v706_v39 = vadd.f32 %v705_v38, %v686_v54  ;;  %1115 = vmatpush.msrb.mxu0 %v984_v12  ;;  %1057 = vmatpush.msrb.mxu1 %v979_v16  ;;  %v1001_v12 = vld [vmem:[#allocation8] sm:$0x3]  ;;  %v1183_v16 = vld [vmem:[#allocation10 + $0x90] sm:$0xff] }
 0x10e   :  { %v1266_v40 = vmul.f32 -1.442695, %v706_v39  ;;  %1116 = vmatpush.msrb.mxu0 %v982_v13  ;;  %1058 = vmatpush.msrb.mxu1 %v977_v18  ;;  %v1184_v13 = vld [vmem:[#allocation10 + $0x98] sm:$0xff]  ;;  %v1004_v18 = vperm.slane %v1001_v12, 1 }
 0x110   :  { %1288 = vpow2.f32 %v1266_v40  ;;  %1117 = vmatpush.msrb.mxu0 %v980_v17  ;;  %1059 = vmatpush.msrb.mxu1 %v975_v22  ;;  %v1003_v17 = vperm.slane %v1001_v12, 0 }
 0x112   :  { %1118 = vmatpush.msrb.mxu0 %v978_v19  ;;  %1060 = vmatpush.msrb.mxu1 %v973_v24  ;;  %v1181_v24 = vld [vmem:[#allocation10 + $0x80] sm:$0xff] }
 0x114   :  { %1119 = vmatpush.msrb.mxu0 %v976_v23  ;;  %1061 = vmatpush.msrb.mxu1 %v971_v27  ;;  %v1165_v23 = vld [vmem:[#allocation10] sm:$0xff] }
 0x116   :  { %v1289_v41 = vpop.eup %1288  ;;  %1120 = vmatpush.msrb.mxu0 %v974_v25  ;;  %1062 = vmatpush.msrb.mxu1 %v969_v30 }
 0x117   :  { %v858_v42 = vadd.f32 1.0, %v1289_v41 }
 0x118   :  { %1121 = vmatpush.msrb.mxu0 %v972_v28  ;;  %1201 = vmatpush.msra.mxu1 %v1180_v47 }
 0x119   :  { %1290 = vrcp.f32 %v858_v42  ;;  %v886_v45 = vand.u32 2147483648, %v858_v42  ;;  %vm880_vm5 = vweird.f32 %v858_v42  ;;  %v884_v46 = vand.u32 2147483647, %v858_v42 }
 0x11a   :  { %1122 = vmatpush.msrb.mxu0 %v970_v31 }
 0x11b   :  { %v887_v52 = vor.u32 1.1754944e-38, %v886_v45  ;;  %vm885_vm8 = vcmp.eq.f32.partialorder %v884_v46, 8.507059e+37 }
 0x11f   :  { %v1291_v43 = vpop.eup %1290 }
 0x120   :  { %v876_v48 = vmul.f32 %v1291_v43, %v858_v42  ;;  %vm881_vm6 = vweird.f32 %v1291_v43 }
 0x121   :  { %vm882_vm7 = vmor %vm880_vm5, %vm881_vm6 }
 0x122   :  { %v877_v44 = vsub.f32 1.0, %v876_v48 }
 0x124   :  { %v878_v49 = vmul.f32 %v1291_v43, %v877_v44 }
 0x126   :  { %v879_v51 = vadd.f32 %v1291_v43, %v878_v49 }
 0x128   :  { %v883_v55 = vsel %vm882_vm7, %v1291_v43, %v879_v51  ;;  %v725_v2 = vpop.f32.mrf.mxu1  ;;  %v1179_v51 = vld [vmem:[#allocation10 + $0x70] sm:$0xff] }
 0x129   :  { %v888_v56 = vsel %vm885_vm8, %v887_v52, %v883_v55  ;;  %v726_v4 = vadd.f32 %v725_v2, %v420_v62  ;;  %v745_v10 = vpop.f32.mrf.mxu3  ;;  %v1195_v52 = vld [vmem:[#allocation10 + $0xf0] sm:$0xff]  ;;  %1202 = vmatpush.msra.mxu1 %v1179_v51  ;;  %v1177_v55 = vld [vmem:[#allocation10 + $0x60] sm:$0xff]  ;;  %v1188_v2 = vld [vmem:[#allocation10 + $0xb8] sm:$0xff] }
 0x12a   :  { %1043 = vmatmul.f32.vlgmr.msra.gmra.mxu0 %v888_v56  ;;  %1103 = vmatmul.f32.vlgmr.msra.gmra.mxu2 %v888_v56  ;;  %v1193_v56 = vld [vmem:[#allocation10 + $0xe0] sm:$0xff] }
 0x12b   :  { %v746_v14 = vadd.f32 %v745_v10, %v726_v4  ;;  %1222 = vmatpush.msra.mxu3 %v1195_v52  ;;  %1203 = vmatpush.msra.mxu1 %v1178_v7  ;;  %v1173_v62 = vld [vmem:[#allocation10 + $0x40] sm:$0xff]  ;;  %v1170_v4 = vld [vmem:[#allocation10 + $0x28] sm:$0xff] }
 0x12c   :  { %v765_v15 = vpop.f32.mrf.mxu0  ;;  %v1169_v10 = vld [vmem:[#allocation10 + $0x20] sm:$0xff] }
 0x12d   :  { %v766_v20 = vadd.f32 %v765_v15, %v746_v14  ;;  %v785_v21 = vpop.f32.mrf.mxu2  ;;  %1223 = vmatpush.msra.mxu3 %v1194_v53  ;;  %1204 = vmatpush.msra.mxu1 %v1177_v55  ;;  %v1167_v15 = vld [vmem:[#allocation10 + $0x10] sm:$0xff] }
 0x12f   :  { %v786_v26 = vadd.f32 %v785_v21, %v766_v20  ;;  %1224 = vmatpush.msra.mxu3 %v1193_v56  ;;  %1205 = vmatpush.msra.mxu1 %v1176_v57  ;;  %v1166_v20 = vld [vmem:[#allocation10 + $0x8] sm:$0xff] }
 0x130   :  { %v1182_v21 = vld [vmem:[#allocation10 + $0x88] sm:$0xff] }
 0x131   :  { %1225 = vmatpush.msra.mxu3 %v1192_v58  ;;  %1206 = vmatpush.msra.mxu1 %v1175_v59  ;;  %v1283_v58 = vld [vmem:[#allocation11] ss:$0 sm:$0xff] }
 0x133   :  { %1226 = vmatpush.msra.mxu3 %v1191_v63  ;;  %1207 = vmatpush.msra.mxu1 %v1174_v60 }
 0x134   :  { %v845_v34 = vpop.f32.mrf.mxu0 }
 0x135   :  { %1227 = vmatpush.msra.mxu3 %v1190_v61  ;;  %1208 = vmatpush.msra.mxu1 %v1173_v62 }
 0x137   :  { %1228 = vmatpush.msra.mxu3 %v1189_v0  ;;  %1209 = vmatpush.msra.mxu1 %v1172_v1 }
 0x139   :  { %1229 = vmatpush.msra.mxu3 %v1188_v2  ;;  %1210 = vmatpush.msra.mxu1 %v1171_v9 }
 0x13b   :  { %1230 = vmatpush.msra.mxu3 %v1187_v3  ;;  %1211 = vmatpush.msra.mxu1 %v1170_v4 }
 0x13d   :  { %1231 = vmatpush.msra.mxu3 %v1186_v6  ;;  %1212 = vmatpush.msra.mxu1 %v1169_v10 }
 0x13f   :  { %1232 = vmatpush.msra.mxu3 %v1185_v11  ;;  %1213 = vmatpush.msra.mxu1 %v1168_v5 }
 0x141   :  { %1233 = vmatpush.msra.mxu3 %v1184_v13  ;;  %1214 = vmatpush.msra.mxu1 %v1167_v15 }
 0x143   :  { %1234 = vmatpush.msra.mxu3 %v1183_v16  ;;  %1215 = vmatpush.msra.mxu1 %v1166_v20 }
 0x144   :  { %v805_v29 = vpop.f32.mrf.mxu1 }
 0x145   :  { %v806_v32 = vadd.f32 %v805_v29, %v786_v26  ;;  %v825_v33 = vpop.f32.mrf.mxu3  ;;  %1235 = vmatpush.msra.mxu3 %v1182_v21  ;;  %1216 = vmatpush.msra.mxu1 %v1165_v23 }
 0x147   :  { %v826_v35 = vadd.f32 %v825_v33, %v806_v32  ;;  %1236 = vmatpush.msra.mxu3 %v1181_v24 }
 0x149   :  { %v846_v36 = vadd.f32 %v845_v34, %v826_v35 }
 0x14b   :  { %v1267_v37 = vmul.f32 -1.442695, %v846_v36 }
 0x14d   :  { %1292 = vpow2.f32 %v1267_v37 }
 0x153   :  { %v1293_v54 = vpop.eup %1292 }
 0x154   :  { %v859_v38 = vadd.f32 1.0, %v1293_v54 }
 0x156   :  { %1294 = vrcp.f32 %v859_v38  ;;  %v901_v42 = vand.u32 2147483648, %v859_v38  ;;  %v899_v48 = vand.u32 2147483647, %v859_v38  ;;  %vm895_vm10 = vweird.f32 %v859_v38 }
 0x158   :  { %v902_v45 = vor.u32 1.1754944e-38, %v901_v42  ;;  %vm900_vm12 = vcmp.eq.f32.partialorder %v899_v48, 8.507059e+37 }
 0x15c   :  { %v1295_v39 = vpop.eup %1294 }
 0x15d   :  { %v891_v40 = vmul.f32 %v1295_v39, %v859_v38  ;;  %vm896_vm9 = vweird.f32 %v1295_v39 }
 0x15e   :  { %vm897_vm11 = vmor %vm895_vm10, %vm896_vm9 }
 0x15f   :  { %v892_v41 = vsub.f32 1.0, %v891_v40 }
 0x161   :  { %v893_v43 = vmul.f32 %v1295_v39, %v892_v41 }
 0x163   :  { %v894_v44 = vadd.f32 %v1295_v39, %v893_v43 }
 0x165   :  { %v898_v49 = vsel %vm897_vm11, %v1295_v39, %v894_v44 }
 0x166   :  { %v903_v46 = vsel %vm900_vm12, %v902_v45, %v898_v49 }
 0x167   :  { %1063 = vmatmul.f32.vlgmr.msrb.gmra.mxu1 %v903_v46  ;;  %1123 = vmatmul.f32.vlgmr.msrb.gmra.mxu0 %v903_v46 }
 0x184   :  { %v1024_v8 = vpop.f32.mrf.mxu2  ;;  %v1084_v19 = vpop.f32.mrf.mxu3 }
 0x185   :  { %v1025_v25 = vadd.f32 %v1024_v8, %v1003_v17  ;;  %v1085_v26 = vadd.f32 %v1084_v19, %v1004_v18 }
 0x1a7   :  { %v1044_v14 = vpop.f32.mrf.mxu0 }
 0x1a8   :  { %v1045_v27 = vadd.f32 %v1044_v14, %v1025_v25 }
 0x1ad   :  { %v1104_v22 = vpop.f32.mrf.mxu2 }
 0x1ae   :  { %v1105_v28 = vadd.f32 %v1104_v22, %v1085_v26 }
 0x1e4   :  { %v1064_v29 = vpop.f32.mrf.mxu1  ;;  %v1124_v30 = vpop.f32.mrf.mxu0 }
 0x1e5   :  { %v1065_v31 = vadd.f32 %v1064_v29, %v1045_v27  ;;  %v1125_v32 = vadd.f32 %v1124_v30, %v1105_v28 }
 0x1e7   :  { %v1268_v33 = vmul.f32 -1.442695, %v1065_v31  ;;  %v1269_v34 = vmul.f32 -1.442695, %v1125_v32 }
 0x1e9   :  { %1296 = vpow2.f32 %v1268_v33 }
 0x1ea   :  { %1298 = vpow2.f32 %v1269_v34 }
 0x1ef   :  { %v1297_v35 = vpop.eup %1296 }
 0x1f0   :  { %v1299_v36 = vpop.eup %1298  ;;  %v1133_v37 = vadd.f32 1.0, %v1297_v35 }
 0x1f1   :  { %v1134_v54 = vadd.f32 1.0, %v1299_v36 }
 0x1f2   :  { %1300 = vrcp.f32 %v1133_v37  ;;  %v1146_v43 = vand.u32 2147483648, %v1133_v37  ;;  %v1144_v45 = vand.u32 2147483647, %v1133_v37  ;;  %vm1140_vm15 = vweird.f32 %v1133_v37 }
 0x1f3   :  { %1302 = vrcp.f32 %v1134_v54  ;;  %v1161_v49 = vand.u32 2147483648, %v1134_v54  ;;  %v1159_v47 = vand.u32 2147483647, %v1134_v54  ;;  %vm1155_vm1 = vweird.f32 %v1134_v54 }
 0x1f4   :  { %v1147_v51 = vor.u32 1.1754944e-38, %v1146_v43  ;;  %vm1145_vm2 = vcmp.eq.f32.partialorder %v1144_v45, 8.507059e+37 }
 0x1f5   :  { %v1162_v53 = vor.u32 1.1754944e-38, %v1161_v49  ;;  %vm1160_vm4 = vcmp.eq.f32.partialorder %v1159_v47, 8.507059e+37 }
 0x1f8   :  { %v1301_v38 = vpop.eup %1300 }
 0x1f9   :  { %v1303_v39 = vpop.eup %1302  ;;  %v1136_v40 = vmul.f32 %v1301_v38, %v1133_v37  ;;  %vm1141_vm13 = vweird.f32 %v1301_v38 }
 0x1fa   :  { %v1151_v41 = vmul.f32 %v1303_v39, %v1134_v54  ;;  %vm1156_vm14 = vweird.f32 %v1303_v39  ;;  %vm1142_vm0 = vmor %vm1140_vm15, %vm1141_vm13 }
 0x1fb   :  { %v1137_v42 = vsub.f32 1.0, %v1136_v40  ;;  %vm1157_vm3 = vmor %vm1155_vm1, %vm1156_vm14 }
 0x1fc   :  { %v1152_v48 = vsub.f32 1.0, %v1151_v41 }
 0x1fd   :  { %v1138_v44 = vmul.f32 %v1301_v38, %v1137_v42 }
 0x1fe   :  { %v1153_v46 = vmul.f32 %v1303_v39, %v1152_v48 }
 0x1ff   :  { %v1139_v50 = vadd.f32 %v1301_v38, %v1138_v44 }
 0x200   :  { %v1154_v52 = vadd.f32 %v1303_v39, %v1153_v46 }
 0x201   :  { %v1143_v7 = vsel %vm1142_vm0, %v1301_v38, %v1139_v50 }
 0x202   :  { %v1148_v55 = vsel %vm1145_vm2, %v1147_v51, %v1143_v7  ;;  %v1158_v56 = vsel %vm1157_vm3, %v1303_v39, %v1154_v52 }
 0x203   :  { %1217 = vmatmul.f32.vlgmr.msra.gmra.mxu1 %v1148_v55  ;;  %v1163_v57 = vsel %vm1160_vm4, %v1162_v53, %v1158_v56 }
 0x204   :  { %1237 = vmatmul.f32.vlgmr.msra.gmra.mxu3 %v1163_v57 }
 0x280   :  { %v1218_v59 = vpop.f32.mrf.mxu1 }
 0x281   :  { %v1219_v63 = vadd.f32 %v1283_v58, %v1218_v59 }
 0x287   :  { %v1238_v60 = vpop.f32.mrf.mxu3 }
 0x288   :  { %v1239_v61 = vadd.f32 %v1238_v60, %v1219_v63 }
 0x28a   :  { %1241 = vst [vmem:[#allocation13] sm:$0xff] %v1239_v61 }
 0x28b   :  { %1252 = dma.vmem_to_hbm [thread:$0]  %s1248_s20, 128, %s1250_s1, [#allocation4]  }
 0x28c   :  { %1480 = dma.done.wait [#allocation4], 128  }
 0x28d   :  { %1481 = vsyncadd [#allocation4], 4294967168 }
 0x28e   :  { %1257 = vsyncpa [#allocation3], 1 }
 0x28f   :  { %1258 = vsyncpa [#allocation6], 1 }
 0x290   :  { %1259 = vsyncpa [#allocation9], 1 }
 0x291   :  { %1260 = vsyncpa [#allocation12], 1 }
 0x292   :  { %1261 = vsyncpa [#allocation4], 1 }

</bundles_post_ra>
